<compile_context>
chip_gen: v7x
topology: tpu7x:2x2x1
jax: 0.10.0
libtpu: 0.0.40
codegen_flags: <defaults>
</compile_context>

<pallas_src>
import functools

import numpy as np
import jax
import jax.numpy as jnp
from jax import lax
from jax.experimental import pallas as pl
from jax.experimental.pallas import tpu as pltpu


# ----------------------------------------------------------------------------
# Fused Pallas kernel: one invocation == the whole layer, all batch elements.
# ----------------------------------------------------------------------------

def _transformer_layer_kernel(x_ref, wqkv_ref, bqkv_ref, wout_ref, bout_ref,
                              wmlp_ref, o_ref, *, num_heads):
    L, N, C = x_ref.shape
    H = num_heads
    Dh = C // H

    x_all = x_ref[...]                               # (L, N, C), one block load
    w_qkv = wqkv_ref[...]                            # (C, 3C)  bf16
    b_qkv = bqkv_ref[...].astype(jnp.float32)        # (1, 3C)  f32 (Q third pre-scaled)
    w_out = wout_ref[...]                            # (C, C)   bf16
    b_out = bout_ref[...].astype(jnp.float32)        # (1, C)   f32
    w_mlp = wmlp_ref[...]                            # (C, C)   bf16
    cdt = w_qkv.dtype                                # MXU compute dtype (bf16)

    outs = []
    for n in range(N):                               # static unroll, small batch
        xb = x_all[:, n, :]                          # (L, C)
        xb_f32 = xb.astype(jnp.float32)
        xb_c = xb.astype(cdt)

        # Fused (q/k/v ∘ in_proj) projection: one (L,C)@(C,3C) matmul.
        qkv = jnp.dot(xb_c, w_qkv,
                      preferred_element_type=jnp.float32) + b_qkv   # (L, 3C) f32

        heads = []
        for h in range(H):                           # TODO(synk): lax.fori_loop for H >= 8
            q = qkv[:, h * Dh:(h + 1) * Dh]          # (L, Dh), scale already folded in
            k = qkv[:, C + h * Dh: C + (h + 1) * Dh]
            v = qkv[:, 2 * C + h * Dh: 2 * C + (h + 1) * Dh]

            # scores = q @ k^T  (bf16 operands, f32 accumulate)
            s = lax.dot_general(q.astype(cdt), k.astype(cdt),
                                (((1,), (1,)), ((), ())),
                                preferred_element_type=jnp.float32)  # (L, L)
            s = s - jnp.max(s, axis=-1, keepdims=True)
            p = jnp.exp(s)
            p = p * pl.reciprocal(jnp.sum(p, axis=-1, keepdims=True), approx=True)

            heads.append(jnp.dot(p.astype(cdt), v.astype(cdt),
                                 preferred_element_type=jnp.float32))  # (L, Dh)

        # concat(heads) then ONE K=C out_proj matmul, residual + bias in epilogue
        o_cat = jnp.concatenate(heads, axis=-1)       # (L, C) f32
        x1 = xb_f32 + b_out + jnp.dot(o_cat.astype(cdt), w_out,
                                      preferred_element_type=jnp.float32)

        # Folded MLP (fc2 ∘ fc1, no nonlinearity between) + second residual.
        out = x1 + jnp.dot(x1.astype(cdt), w_mlp,
                           preferred_element_type=jnp.float32)
        outs.append(out)

    o_ref[...] = jnp.stack(outs, axis=1).astype(o_ref.dtype)   # (L, N, C)


# ----------------------------------------------------------------------------
# Weight folding / packing (tiny CxC matmuls, done once per forward, f32)
# ----------------------------------------------------------------------------

def _fold_params(p, num_heads, compute_dtype=jnp.bfloat16):
    C = p["wq"].shape[0]
    Dh = C // num_heads
    scale = 1.0 / float(np.sqrt(Dh))
    f32 = jnp.float32

    wq_i, wk_i, wv_i = jnp.split(p["in_proj_w"], 3, axis=0)
    bq, bk, bv = jnp.split(p["in_proj_b"], 3, axis=0)

    # effective torch-layout (out,in) weights of the composed linears;
    # the 1/sqrt(Dh) attention scale is folded into the Q third (exact).
    wq_eff = (jnp.dot(wq_i.astype(f32), p["wq"].astype(f32)) * scale)
    wk_eff = jnp.dot(wk_i.astype(f32), p["wk"].astype(f32))
    wv_eff = jnp.dot(wv_i.astype(f32), p["wv"].astype(f32))

    # pack into x @ W layout (in, out) and fuse along output channels [Q|K|V];
    # each third is already head-major (head h = cols h*Dh:(h+1)*Dh).
    w_qkv = jnp.concatenate([wq_eff.T, wk_eff.T, wv_eff.T], axis=1)      # (C, 3C)
    b_qkv = jnp.concatenate([bq.astype(f32) * scale, bk.astype(f32),
                             bv.astype(f32)]).reshape(1, 3 * C)          # (1, 3C)

    w_out = p["out_proj_w"].astype(f32).T                                # (C, C)
    b_out = p["out_proj_b"].astype(f32).reshape(1, C)                    # (1, C)

    # fc2(fc1(x)) = x @ (fc2 @ fc1)^T
    w_mlp = jnp.dot(p["fc2"].astype(f32), p["fc1"].astype(f32)).T        # (C, C)

    return (w_qkv.astype(compute_dtype), b_qkv,
            w_out.astype(compute_dtype), b_out,
            w_mlp.astype(compute_dtype))


# ----------------------------------------------------------------------------
# TransformerLayer forward
# ----------------------------------------------------------------------------

def transformer_layer(x, p, num_heads, compute_dtype=jnp.bfloat16):
    L, N, C = x.shape
    w_qkv, b_qkv, w_out, b_out, w_mlp = _fold_params(p, num_heads, compute_dtype)

    kernel = functools.partial(_transformer_layer_kernel, num_heads=num_heads)

    def const(shape):
        return pl.BlockSpec(shape, lambda i, _r=len(shape): (0,) * _r)

    return pl.pallas_call(
        kernel,
        out_shape=jax.ShapeDtypeStruct((L, N, C), x.dtype),
        grid=(1,),
        in_specs=[
            pl.BlockSpec((L, N, C), lambda i: (0, 0, 0)),   # x, full block (no transpose)
            const((C, 3 * C)),                              # fused QKV weight (bf16)
            const((1, 3 * C)),                              # fused QKV bias   (f32)
            const((C, C)),                                  # out_proj weight  (bf16)
            const((1, C)),                                  # out_proj bias    (f32)
            const((C, C)),                                  # folded MLP weight(bf16)
        ],
        out_specs=pl.BlockSpec((L, N, C), lambda i: (0, 0, 0)),
        compiler_params=pltpu.CompilerParams(
            dimension_semantics=("arbitrary",),
            vmem_limit_bytes=32 * 1024 * 1024,   # explicit budget (v5e default is only 16 MiB)
        ),
    )(x, w_qkv, b_qkv, w_out, b_out, w_mlp)


# ----------------------------------------------------------------------------
# Pure-JAX reference (unfused, f32, mirrors the PyTorch module exactly)
# ----------------------------------------------------------------------------

def transformer_layer_ref(x, p, num_heads):
    L, N, C = x.shape
    H = num_heads
    Dh = C // H

    def lin(a, w, b=None):
        y = jnp.einsum("lnc,oc->lno", a, w)
        return y if b is None else y + b

    q = lin(x, p["wq"]); k = lin(x, p["wk"]); v = lin(x, p["wv"])
    wq_i, wk_i, wv_i = jnp.split(p["in_proj_w"], 3, axis=0)
    bq, bk, bv = jnp.split(p["in_proj_b"], 3, axis=0)
    qp = lin(q, wq_i, bq); kp = lin(k, wk_i, bk); vp = lin(v, wv_i, bv)

    qh = qp.reshape(L, N * H, Dh).transpose(1, 0, 2) * (1.0 / np.sqrt(Dh))
    kh = kp.reshape(L, N * H, Dh).transpose(1, 0, 2)
    vh = vp.reshape(L, N * H, Dh).transpose(1, 0, 2)

    s = jnp.einsum("bqd,bkd->bqk", qh, kh)
    a = jax.nn.softmax(s, axis=-1)
    oh = jnp.einsum("bqk,bkd->bqd", a, vh)
    o = oh.transpose(1, 0, 2).reshape(L, N, C)
    o = lin(o, p["out_proj_w"], p["out_proj_b"])
    x1 = o + x
    h = lin(lin(x1, p["fc1"]), p["fc2"])
    return h + x1


# ----------------------------------------------------------------------------
# Deterministic parameter init (shapes implied by TransformerLayer.__init__)
# ----------------------------------------------------------------------------

def init_params(key, c):
    ks = jax.random.split(key, 9)
    s = 1.0 / np.sqrt(c)
    u = lambda k, shape: jax.random.uniform(k, shape, jnp.float32, -s, s)
    return {
        "wq": u(ks[0], (c, c)),              # nn.Linear(c, c, bias=False)
        "wk": u(ks[1], (c, c)),
        "wv": u(ks[2], (c, c)),
        "in_proj_w": u(ks[3], (3 * c, c)),   # MHA in_proj_weight
        "in_proj_b": u(ks[4], (3 * c,)),     # MHA in_proj_bias
        "out_proj_w": u(ks[5], (c, c)),      # MHA out_proj.weight
        "out_proj_b": u(ks[6], (c,)),        # MHA out_proj.bias
        "fc1": u(ks[7], (c, c)),             # nn.Linear(c, c, bias=False)
        "fc2": u(ks[8], (c, c)),
    }


if __name__ == "__main__":
    L, N, C, H = 8, 2, 32, 4  # seq, batch, channels, heads

    key = jax.random.PRNGKey(0)
    kx, kp = jax.random.split(key)
    x = jax.random.normal(kx, (L, N, C), jnp.float32)
    params = init_params(kp, C)

    fwd = jax.jit(functools.partial(transformer_layer, num_heads=H))
    out = jax.block_until_ready(fwd(x, params))

    ref = transformer_layer_ref(x, params, H)
    # Tolerance covers bf16 MXU operands (f32 accumulation), the exact-but-
    # differently-rounded weight folds, and the EUP approximate reciprocal in
    # the softmax; typical observed error is ~1e-2 absolute on O(1) outputs.
    np.testing.assert_allclose(np.asarray(out), np.asarray(ref),
                               rtol=3e-2, atol=3e-2)
    print("KERNEL_OK")
</pallas_src>

<mosaic_0001>
module attributes {stable_mosaic.version = 11 : i64} {
  func.func @_transformer_layer_kernel(%arg0: i32, %arg1: memref<8x2x32xf32, #tpu.memory_space<vmem>>, %arg2: memref<32x96xbf16, #tpu.memory_space<vmem>>, %arg3: memref<1x96xf32, #tpu.memory_space<vmem>>, %arg4: memref<32x32xbf16, #tpu.memory_space<vmem>>, %arg5: memref<1x32xf32, #tpu.memory_space<vmem>>, %arg6: memref<32x32xbf16, #tpu.memory_space<vmem>>, %arg7: memref<8x2x32xf32, #tpu.memory_space<vmem>>) attributes {dimension_semantics = [#tpu.dimension_semantics<arbitrary>], iteration_bounds = array<i64: 1>, scalar_prefetch = 0 : i64, scratch_operands = 0 : i64, tpu.core_type = #tpu.core_type<tc>, window_params = [{pipeline_mode = #tpu.pipeline_mode<synchronous>, transform_indices = @transform_0, window_bounds = array<i64: 8, 2, 32>}, {pipeline_mode = #tpu.pipeline_mode<synchronous>, transform_indices = @transform_1, window_bounds = array<i64: 32, 96>}, {pipeline_mode = #tpu.pipeline_mode<synchronous>, transform_indices = @transform_2, window_bounds = array<i64: 1, 96>}, {pipeline_mode = #tpu.pipeline_mode<synchronous>, transform_indices = @transform_3, window_bounds = array<i64: 32, 32>}, {pipeline_mode = #tpu.pipeline_mode<synchronous>, transform_indices = @transform_4, window_bounds = array<i64: 1, 32>}, {pipeline_mode = #tpu.pipeline_mode<synchronous>, transform_indices = @transform_5, window_bounds = array<i64: 32, 32>}, {pipeline_mode = #tpu.pipeline_mode<synchronous>, transform_indices = @transform_6, window_bounds = array<i64: 8, 2, 32>}]} {
    %c0 = arith.constant 0 : index
    %c0_0 = arith.constant 0 : index
    %c0_1 = arith.constant 0 : index
    %0 = vector.load %arg1[%c0, %c0_0, %c0_1] : memref<8x2x32xf32, #tpu.memory_space<vmem>>, vector<8x2x32xf32>
    %c0_2 = arith.constant 0 : index
    %c0_3 = arith.constant 0 : index
    %1 = vector.load %arg2[%c0_2, %c0_3] : memref<32x96xbf16, #tpu.memory_space<vmem>>, vector<32x96xbf16>
    %c0_4 = arith.constant 0 : index
    %c0_5 = arith.constant 0 : index
    %2 = vector.load %arg3[%c0_4, %c0_5] : memref<1x96xf32, #tpu.memory_space<vmem>>, vector<1x96xf32>
    %c0_6 = arith.constant 0 : index
    %c0_7 = arith.constant 0 : index
    %3 = vector.load %arg4[%c0_6, %c0_7] : memref<32x32xbf16, #tpu.memory_space<vmem>>, vector<32x32xbf16>
    %c0_8 = arith.constant 0 : index
    %c0_9 = arith.constant 0 : index
    %4 = vector.load %arg5[%c0_8, %c0_9] : memref<1x32xf32, #tpu.memory_space<vmem>>, vector<1x32xf32>
    %c0_10 = arith.constant 0 : index
    %c0_11 = arith.constant 0 : index
    %5 = vector.load %arg6[%c0_10, %c0_11] : memref<32x32xbf16, #tpu.memory_space<vmem>>, vector<32x32xbf16>
    %6 = vector.extract_strided_slice %0 {offsets = [0, 0, 0], sizes = [8, 1, 32], strides = [1, 1, 1]} : vector<8x2x32xf32> to vector<8x1x32xf32>
    %7 = vector.shape_cast %6 : vector<8x1x32xf32> to vector<8x32xf32>
    %8 = arith.truncf %7 : vector<8x32xf32> to vector<8x32xbf16>
    %cst = arith.constant dense<0.000000e+00> : vector<8x96xf32>
    %9 = tpu.matmul %8, %1, %cst {dimension_numbers = #tpu.dot_dimension_numbers<[1], [0], [0], [1], [0, 0, 1, 1], [], []>} : vector<8x32xbf16>, vector<32x96xbf16>, vector<8x96xf32> -> vector<8x96xf32>
    %10 = vector.broadcast %2 : vector<1x96xf32> to vector<8x96xf32>
    %11 = arith.addf %9, %10 : vector<8x96xf32>
    %12 = vector.extract_strided_slice %11 {offsets = [0, 0], sizes = [8, 8], strides = [1, 1]} : vector<8x96xf32> to vector<8x8xf32>
    %13 = vector.extract_strided_slice %11 {offsets = [0, 32], sizes = [8, 8], strides = [1, 1]} : vector<8x96xf32> to vector<8x8xf32>
    %14 = vector.extract_strided_slice %11 {offsets = [0, 64], sizes = [8, 8], strides = [1, 1]} : vector<8x96xf32> to vector<8x8xf32>
    %15 = arith.truncf %12 : vector<8x8xf32> to vector<8x8xbf16>
    %16 = arith.truncf %13 : vector<8x8xf32> to vector<8x8xbf16>
    %cst_12 = arith.constant dense<0.000000e+00> : vector<8x8xf32>
    %17 = tpu.matmul %15, %16, %cst_12 {dimension_numbers = #tpu.dot_dimension_numbers<[1], [1], [0], [0], [0, 0, 1, 0], [], []>} : vector<8x8xbf16>, vector<8x8xbf16>, vector<8x8xf32> -> vector<8x8xf32>
    %cst_13 = arith.constant dense<0xFF800000> : vector<8xf32>
    %18 = vector.multi_reduction <maximumf>, %17, %cst_13 [1] : vector<8x8xf32> to vector<8xf32>
    %19 = vector.shape_cast %18 : vector<8xf32> to vector<8x1xf32>
    %20 = vector.broadcast %19 : vector<8x1xf32> to vector<8x8xf32>
    %21 = arith.subf %17, %20 : vector<8x8xf32>
    %22 = math.exp %21 : vector<8x8xf32>
    %cst_14 = arith.constant dense<0.000000e+00> : vector<8xf32>
    %23 = vector.multi_reduction <add>, %22, %cst_14 [1] : vector<8x8xf32> to vector<8xf32>
    %24 = vector.shape_cast %23 : vector<8xf32> to vector<8x1xf32>
    %25 = tpu.reciprocal %24 {approx = true} : vector<8x1xf32> -> vector<8x1xf32>
    %26 = vector.broadcast %25 : vector<8x1xf32> to vector<8x8xf32>
    %27 = arith.mulf %22, %26 : vector<8x8xf32>
    %28 = arith.truncf %27 : vector<8x8xf32> to vector<8x8xbf16>
    %29 = arith.truncf %14 : vector<8x8xf32> to vector<8x8xbf16>
    %cst_15 = arith.constant dense<0.000000e+00> : vector<8x8xf32>
    %30 = tpu.matmul %28, %29, %cst_15 {dimension_numbers = #tpu.dot_dimension_numbers<[1], [0], [0], [1], [0, 0, 1, 1], [], []>} : vector<8x8xbf16>, vector<8x8xbf16>, vector<8x8xf32> -> vector<8x8xf32>
    %31 = vector.extract_strided_slice %11 {offsets = [0, 8], sizes = [8, 8], strides = [1, 1]} : vector<8x96xf32> to vector<8x8xf32>
    %32 = vector.extract_strided_slice %11 {offsets = [0, 40], sizes = [8, 8], strides = [1, 1]} : vector<8x96xf32> to vector<8x8xf32>
    %33 = vector.extract_strided_slice %11 {offsets = [0, 72], sizes = [8, 8], strides = [1, 1]} : vector<8x96xf32> to vector<8x8xf32>
    %34 = arith.truncf %31 : vector<8x8xf32> to vector<8x8xbf16>
    %35 = arith.truncf %32 : vector<8x8xf32> to vector<8x8xbf16>
    %cst_16 = arith.constant dense<0.000000e+00> : vector<8x8xf32>
    %36 = tpu.matmul %34, %35, %cst_16 {dimension_numbers = #tpu.dot_dimension_numbers<[1], [1], [0], [0], [0, 0, 1, 0], [], []>} : vector<8x8xbf16>, vector<8x8xbf16>, vector<8x8xf32> -> vector<8x8xf32>
    %cst_17 = arith.constant dense<0xFF800000> : vector<8xf32>
    %37 = vector.multi_reduction <maximumf>, %36, %cst_17 [1] : vector<8x8xf32> to vector<8xf32>
    %38 = vector.shape_cast %37 : vector<8xf32> to vector<8x1xf32>
    %39 = vector.broadcast %38 : vector<8x1xf32> to vector<8x8xf32>
    %40 = arith.subf %36, %39 : vector<8x8xf32>
    %41 = math.exp %40 : vector<8x8xf32>
    %cst_18 = arith.constant dense<0.000000e+00> : vector<8xf32>
    %42 = vector.multi_reduction <add>, %41, %cst_18 [1] : vector<8x8xf32> to vector<8xf32>
    %43 = vector.shape_cast %42 : vector<8xf32> to vector<8x1xf32>
    %44 = tpu.reciprocal %43 {approx = true} : vector<8x1xf32> -> vector<8x1xf32>
    %45 = vector.broadcast %44 : vector<8x1xf32> to vector<8x8xf32>
    %46 = arith.mulf %41, %45 : vector<8x8xf32>
    %47 = arith.truncf %46 : vector<8x8xf32> to vector<8x8xbf16>
    %48 = arith.truncf %33 : vector<8x8xf32> to vector<8x8xbf16>
    %cst_19 = arith.constant dense<0.000000e+00> : vector<8x8xf32>
    %49 = tpu.matmul %47, %48, %cst_19 {dimension_numbers = #tpu.dot_dimension_numbers<[1], [0], [0], [1], [0, 0, 1, 1], [], []>} : vector<8x8xbf16>, vector<8x8xbf16>, vector<8x8xf32> -> vector<8x8xf32>
    %50 = vector.extract_strided_slice %11 {offsets = [0, 16], sizes = [8, 8], strides = [1, 1]} : vector<8x96xf32> to vector<8x8xf32>
    %51 = vector.extract_strided_slice %11 {offsets = [0, 48], sizes = [8, 8], strides = [1, 1]} : vector<8x96xf32> to vector<8x8xf32>
    %52 = vector.extract_strided_slice %11 {offsets = [0, 80], sizes = [8, 8], strides = [1, 1]} : vector<8x96xf32> to vector<8x8xf32>
    %53 = arith.truncf %50 : vector<8x8xf32> to vector<8x8xbf16>
    %54 = arith.truncf %51 : vector<8x8xf32> to vector<8x8xbf16>
    %cst_20 = arith.constant dense<0.000000e+00> : vector<8x8xf32>
    %55 = tpu.matmul %53, %54, %cst_20 {dimension_numbers = #tpu.dot_dimension_numbers<[1], [1], [0], [0], [0, 0, 1, 0], [], []>} : vector<8x8xbf16>, vector<8x8xbf16>, vector<8x8xf32> -> vector<8x8xf32>
    %cst_21 = arith.constant dense<0xFF800000> : vector<8xf32>
    %56 = vector.multi_reduction <maximumf>, %55, %cst_21 [1] : vector<8x8xf32> to vector<8xf32>
    %57 = vector.shape_cast %56 : vector<8xf32> to vector<8x1xf32>
    %58 = vector.broadcast %57 : vector<8x1xf32> to vector<8x8xf32>
    %59 = arith.subf %55, %58 : vector<8x8xf32>
    %60 = math.exp %59 : vector<8x8xf32>
    %cst_22 = arith.constant dense<0.000000e+00> : vector<8xf32>
    %61 = vector.multi_reduction <add>, %60, %cst_22 [1] : vector<8x8xf32> to vector<8xf32>
    %62 = vector.shape_cast %61 : vector<8xf32> to vector<8x1xf32>
    %63 = tpu.reciprocal %62 {approx = true} : vector<8x1xf32> -> vector<8x1xf32>
    %64 = vector.broadcast %63 : vector<8x1xf32> to vector<8x8xf32>
    %65 = arith.mulf %60, %64 : vector<8x8xf32>
    %66 = arith.truncf %65 : vector<8x8xf32> to vector<8x8xbf16>
    %67 = arith.truncf %52 : vector<8x8xf32> to vector<8x8xbf16>
    %cst_23 = arith.constant dense<0.000000e+00> : vector<8x8xf32>
    %68 = tpu.matmul %66, %67, %cst_23 {dimension_numbers = #tpu.dot_dimension_numbers<[1], [0], [0], [1], [0, 0, 1, 1], [], []>} : vector<8x8xbf16>, vector<8x8xbf16>, vector<8x8xf32> -> vector<8x8xf32>
    %69 = vector.extract_strided_slice %11 {offsets = [0, 24], sizes = [8, 8], strides = [1, 1]} : vector<8x96xf32> to vector<8x8xf32>
    %70 = vector.extract_strided_slice %11 {offsets = [0, 56], sizes = [8, 8], strides = [1, 1]} : vector<8x96xf32> to vector<8x8xf32>
    %71 = vector.extract_strided_slice %11 {offsets = [0, 88], sizes = [8, 8], strides = [1, 1]} : vector<8x96xf32> to vector<8x8xf32>
    %72 = arith.truncf %69 : vector<8x8xf32> to vector<8x8xbf16>
    %73 = arith.truncf %70 : vector<8x8xf32> to vector<8x8xbf16>
    %cst_24 = arith.constant dense<0.000000e+00> : vector<8x8xf32>
    %74 = tpu.matmul %72, %73, %cst_24 {dimension_numbers = #tpu.dot_dimension_numbers<[1], [1], [0], [0], [0, 0, 1, 0], [], []>} : vector<8x8xbf16>, vector<8x8xbf16>, vector<8x8xf32> -> vector<8x8xf32>
    %cst_25 = arith.constant dense<0xFF800000> : vector<8xf32>
    %75 = vector.multi_reduction <maximumf>, %74, %cst_25 [1] : vector<8x8xf32> to vector<8xf32>
    %76 = vector.shape_cast %75 : vector<8xf32> to vector<8x1xf32>
    %77 = vector.broadcast %76 : vector<8x1xf32> to vector<8x8xf32>
    %78 = arith.subf %74, %77 : vector<8x8xf32>
    %79 = math.exp %78 : vector<8x8xf32>
    %cst_26 = arith.constant dense<0.000000e+00> : vector<8xf32>
    %80 = vector.multi_reduction <add>, %79, %cst_26 [1] : vector<8x8xf32> to vector<8xf32>
    %81 = vector.shape_cast %80 : vector<8xf32> to vector<8x1xf32>
    %82 = tpu.reciprocal %81 {approx = true} : vector<8x1xf32> -> vector<8x1xf32>
    %83 = vector.broadcast %82 : vector<8x1xf32> to vector<8x8xf32>
    %84 = arith.mulf %79, %83 : vector<8x8xf32>
    %85 = arith.truncf %84 : vector<8x8xf32> to vector<8x8xbf16>
    %86 = arith.truncf %71 : vector<8x8xf32> to vector<8x8xbf16>
    %cst_27 = arith.constant dense<0.000000e+00> : vector<8x8xf32>
    %87 = tpu.matmul %85, %86, %cst_27 {dimension_numbers = #tpu.dot_dimension_numbers<[1], [0], [0], [1], [0, 0, 1, 1], [], []>} : vector<8x8xbf16>, vector<8x8xbf16>, vector<8x8xf32> -> vector<8x8xf32>
    %88 = tpu.concatenate %30, %49, %68, %87 in 1 : vector<8x8xf32>, vector<8x8xf32>, vector<8x8xf32>, vector<8x8xf32> -> vector<8x32xf32>
    %89 = vector.broadcast %4 : vector<1x32xf32> to vector<8x32xf32>
    %90 = arith.addf %7, %89 : vector<8x32xf32>
    %91 = arith.truncf %88 : vector<8x32xf32> to vector<8x32xbf16>
    %cst_28 = arith.constant dense<0.000000e+00> : vector<8x32xf32>
    %92 = tpu.matmul %91, %3, %cst_28 {dimension_numbers = #tpu.dot_dimension_numbers<[1], [0], [0], [1], [0, 0, 1, 1], [], []>} : vector<8x32xbf16>, vector<32x32xbf16>, vector<8x32xf32> -> vector<8x32xf32>
    %93 = arith.addf %90, %92 : vector<8x32xf32>
    %94 = arith.truncf %93 : vector<8x32xf32> to vector<8x32xbf16>
    %cst_29 = arith.constant dense<0.000000e+00> : vector<8x32xf32>
    %95 = tpu.matmul %94, %5, %cst_29 {dimension_numbers = #tpu.dot_dimension_numbers<[1], [0], [0], [1], [0, 0, 1, 1], [], []>} : vector<8x32xbf16>, vector<32x32xbf16>, vector<8x32xf32> -> vector<8x32xf32>
    %96 = arith.addf %93, %95 : vector<8x32xf32>
    %97 = vector.extract_strided_slice %0 {offsets = [0, 1, 0], sizes = [8, 1, 32], strides = [1, 1, 1]} : vector<8x2x32xf32> to vector<8x1x32xf32>
    %98 = vector.shape_cast %97 : vector<8x1x32xf32> to vector<8x32xf32>
    %99 = arith.truncf %98 : vector<8x32xf32> to vector<8x32xbf16>
    %cst_30 = arith.constant dense<0.000000e+00> : vector<8x96xf32>
    %100 = tpu.matmul %99, %1, %cst_30 {dimension_numbers = #tpu.dot_dimension_numbers<[1], [0], [0], [1], [0, 0, 1, 1], [], []>} : vector<8x32xbf16>, vector<32x96xbf16>, vector<8x96xf32> -> vector<8x96xf32>
    %101 = vector.broadcast %2 : vector<1x96xf32> to vector<8x96xf32>
    %102 = arith.addf %100, %101 : vector<8x96xf32>
    %103 = vector.extract_strided_slice %102 {offsets = [0, 0], sizes = [8, 8], strides = [1, 1]} : vector<8x96xf32> to vector<8x8xf32>
    %104 = vector.extract_strided_slice %102 {offsets = [0, 32], sizes = [8, 8], strides = [1, 1]} : vector<8x96xf32> to vector<8x8xf32>
    %105 = vector.extract_strided_slice %102 {offsets = [0, 64], sizes = [8, 8], strides = [1, 1]} : vector<8x96xf32> to vector<8x8xf32>
    %106 = arith.truncf %103 : vector<8x8xf32> to vector<8x8xbf16>
    %107 = arith.truncf %104 : vector<8x8xf32> to vector<8x8xbf16>
    %cst_31 = arith.constant dense<0.000000e+00> : vector<8x8xf32>
    %108 = tpu.matmul %106, %107, %cst_31 {dimension_numbers = #tpu.dot_dimension_numbers<[1], [1], [0], [0], [0, 0, 1, 0], [], []>} : vector<8x8xbf16>, vector<8x8xbf16>, vector<8x8xf32> -> vector<8x8xf32>
    %cst_32 = arith.constant dense<0xFF800000> : vector<8xf32>
    %109 = vector.multi_reduction <maximumf>, %108, %cst_32 [1] : vector<8x8xf32> to vector<8xf32>
    %110 = vector.shape_cast %109 : vector<8xf32> to vector<8x1xf32>
    %111 = vector.broadcast %110 : vector<8x1xf32> to vector<8x8xf32>
    %112 = arith.subf %108, %111 : vector<8x8xf32>
    %113 = math.exp %112 : vector<8x8xf32>
    %cst_33 = arith.constant dense<0.000000e+00> : vector<8xf32>
    %114 = vector.multi_reduction <add>, %113, %cst_33 [1] : vector<8x8xf32> to vector<8xf32>
    %115 = vector.shape_cast %114 : vector<8xf32> to vector<8x1xf32>
    %116 = tpu.reciprocal %115 {approx = true} : vector<8x1xf32> -> vector<8x1xf32>
    %117 = vector.broadcast %116 : vector<8x1xf32> to vector<8x8xf32>
    %118 = arith.mulf %113, %117 : vector<8x8xf32>
    %119 = arith.truncf %118 : vector<8x8xf32> to vector<8x8xbf16>
    %120 = arith.truncf %105 : vector<8x8xf32> to vector<8x8xbf16>
    %cst_34 = arith.constant dense<0.000000e+00> : vector<8x8xf32>
    %121 = tpu.matmul %119, %120, %cst_34 {dimension_numbers = #tpu.dot_dimension_numbers<[1], [0], [0], [1], [0, 0, 1, 1], [], []>} : vector<8x8xbf16>, vector<8x8xbf16>, vector<8x8xf32> -> vector<8x8xf32>
    %122 = vector.extract_strided_slice %102 {offsets = [0, 8], sizes = [8, 8], strides = [1, 1]} : vector<8x96xf32> to vector<8x8xf32>
    %123 = vector.extract_strided_slice %102 {offsets = [0, 40], sizes = [8, 8], strides = [1, 1]} : vector<8x96xf32> to vector<8x8xf32>
    %124 = vector.extract_strided_slice %102 {offsets = [0, 72], sizes = [8, 8], strides = [1, 1]} : vector<8x96xf32> to vector<8x8xf32>
    %125 = arith.truncf %122 : vector<8x8xf32> to vector<8x8xbf16>
    %126 = arith.truncf %123 : vector<8x8xf32> to vector<8x8xbf16>
    %cst_35 = arith.constant dense<0.000000e+00> : vector<8x8xf32>
    %127 = tpu.matmul %125, %126, %cst_35 {dimension_numbers = #tpu.dot_dimension_numbers<[1], [1], [0], [0], [0, 0, 1, 0], [], []>} : vector<8x8xbf16>, vector<8x8xbf16>, vector<8x8xf32> -> vector<8x8xf32>
    %cst_36 = arith.constant dense<0xFF800000> : vector<8xf32>
    %128 = vector.multi_reduction <maximumf>, %127, %cst_36 [1] : vector<8x8xf32> to vector<8xf32>
    %129 = vector.shape_cast %128 : vector<8xf32> to vector<8x1xf32>
    %130 = vector.broadcast %129 : vector<8x1xf32> to vector<8x8xf32>
    %131 = arith.subf %127, %130 : vector<8x8xf32>
    %132 = math.exp %131 : vector<8x8xf32>
    %cst_37 = arith.constant dense<0.000000e+00> : vector<8xf32>
    %133 = vector.multi_reduction <add>, %132, %cst_37 [1] : vector<8x8xf32> to vector<8xf32>
    %134 = vector.shape_cast %133 : vector<8xf32> to vector<8x1xf32>
    %135 = tpu.reciprocal %134 {approx = true} : vector<8x1xf32> -> vector<8x1xf32>
    %136 = vector.broadcast %135 : vector<8x1xf32> to vector<8x8xf32>
    %137 = arith.mulf %132, %136 : vector<8x8xf32>
    %138 = arith.truncf %137 : vector<8x8xf32> to vector<8x8xbf16>
    %139 = arith.truncf %124 : vector<8x8xf32> to vector<8x8xbf16>
    %cst_38 = arith.constant dense<0.000000e+00> : vector<8x8xf32>
    %140 = tpu.matmul %138, %139, %cst_38 {dimension_numbers = #tpu.dot_dimension_numbers<[1], [0], [0], [1], [0, 0, 1, 1], [], []>} : vector<8x8xbf16>, vector<8x8xbf16>, vector<8x8xf32> -> vector<8x8xf32>
    %141 = vector.extract_strided_slice %102 {offsets = [0, 16], sizes = [8, 8], strides = [1, 1]} : vector<8x96xf32> to vector<8x8xf32>
    %142 = vector.extract_strided_slice %102 {offsets = [0, 48], sizes = [8, 8], strides = [1, 1]} : vector<8x96xf32> to vector<8x8xf32>
    %143 = vector.extract_strided_slice %102 {offsets = [0, 80], sizes = [8, 8], strides = [1, 1]} : vector<8x96xf32> to vector<8x8xf32>
    %144 = arith.truncf %141 : vector<8x8xf32> to vector<8x8xbf16>
    %145 = arith.truncf %142 : vector<8x8xf32> to vector<8x8xbf16>
    %cst_39 = arith.constant dense<0.000000e+00> : vector<8x8xf32>
    %146 = tpu.matmul %144, %145, %cst_39 {dimension_numbers = #tpu.dot_dimension_numbers<[1], [1], [0], [0], [0, 0, 1, 0], [], []>} : vector<8x8xbf16>, vector<8x8xbf16>, vector<8x8xf32> -> vector<8x8xf32>
    %cst_40 = arith.constant dense<0xFF800000> : vector<8xf32>
    %147 = vector.multi_reduction <maximumf>, %146, %cst_40 [1] : vector<8x8xf32> to vector<8xf32>
    %148 = vector.shape_cast %147 : vector<8xf32> to vector<8x1xf32>
    %149 = vector.broadcast %148 : vector<8x1xf32> to vector<8x8xf32>
    %150 = arith.subf %146, %149 : vector<8x8xf32>
    %151 = math.exp %150 : vector<8x8xf32>
    %cst_41 = arith.constant dense<0.000000e+00> : vector<8xf32>
    %152 = vector.multi_reduction <add>, %151, %cst_41 [1] : vector<8x8xf32> to vector<8xf32>
    %153 = vector.shape_cast %152 : vector<8xf32> to vector<8x1xf32>
    %154 = tpu.reciprocal %153 {approx = true} : vector<8x1xf32> -> vector<8x1xf32>
    %155 = vector.broadcast %154 : vector<8x1xf32> to vector<8x8xf32>
    %156 = arith.mulf %151, %155 : vector<8x8xf32>
    %157 = arith.truncf %156 : vector<8x8xf32> to vector<8x8xbf16>
    %158 = arith.truncf %143 : vector<8x8xf32> to vector<8x8xbf16>
    %cst_42 = arith.constant dense<0.000000e+00> : vector<8x8xf32>
    %159 = tpu.matmul %157, %158, %cst_42 {dimension_numbers = #tpu.dot_dimension_numbers<[1], [0], [0], [1], [0, 0, 1, 1], [], []>} : vector<8x8xbf16>, vector<8x8xbf16>, vector<8x8xf32> -> vector<8x8xf32>
    %160 = vector.extract_strided_slice %102 {offsets = [0, 24], sizes = [8, 8], strides = [1, 1]} : vector<8x96xf32> to vector<8x8xf32>
    %161 = vector.extract_strided_slice %102 {offsets = [0, 56], sizes = [8, 8], strides = [1, 1]} : vector<8x96xf32> to vector<8x8xf32>
    %162 = vector.extract_strided_slice %102 {offsets = [0, 88], sizes = [8, 8], strides = [1, 1]} : vector<8x96xf32> to vector<8x8xf32>
    %163 = arith.truncf %160 : vector<8x8xf32> to vector<8x8xbf16>
    %164 = arith.truncf %161 : vector<8x8xf32> to vector<8x8xbf16>
    %cst_43 = arith.constant dense<0.000000e+00> : vector<8x8xf32>
    %165 = tpu.matmul %163, %164, %cst_43 {dimension_numbers = #tpu.dot_dimension_numbers<[1], [1], [0], [0], [0, 0, 1, 0], [], []>} : vector<8x8xbf16>, vector<8x8xbf16>, vector<8x8xf32> -> vector<8x8xf32>
    %cst_44 = arith.constant dense<0xFF800000> : vector<8xf32>
    %166 = vector.multi_reduction <maximumf>, %165, %cst_44 [1] : vector<8x8xf32> to vector<8xf32>
    %167 = vector.shape_cast %166 : vector<8xf32> to vector<8x1xf32>
    %168 = vector.broadcast %167 : vector<8x1xf32> to vector<8x8xf32>
    %169 = arith.subf %165, %168 : vector<8x8xf32>
    %170 = math.exp %169 : vector<8x8xf32>
    %cst_45 = arith.constant dense<0.000000e+00> : vector<8xf32>
    %171 = vector.multi_reduction <add>, %170, %cst_45 [1] : vector<8x8xf32> to vector<8xf32>
    %172 = vector.shape_cast %171 : vector<8xf32> to vector<8x1xf32>
    %173 = tpu.reciprocal %172 {approx = true} : vector<8x1xf32> -> vector<8x1xf32>
    %174 = vector.broadcast %173 : vector<8x1xf32> to vector<8x8xf32>
    %175 = arith.mulf %170, %174 : vector<8x8xf32>
    %176 = arith.truncf %175 : vector<8x8xf32> to vector<8x8xbf16>
    %177 = arith.truncf %162 : vector<8x8xf32> to vector<8x8xbf16>
    %cst_46 = arith.constant dense<0.000000e+00> : vector<8x8xf32>
    %178 = tpu.matmul %176, %177, %cst_46 {dimension_numbers = #tpu.dot_dimension_numbers<[1], [0], [0], [1], [0, 0, 1, 1], [], []>} : vector<8x8xbf16>, vector<8x8xbf16>, vector<8x8xf32> -> vector<8x8xf32>
    %179 = tpu.concatenate %121, %140, %159, %178 in 1 : vector<8x8xf32>, vector<8x8xf32>, vector<8x8xf32>, vector<8x8xf32> -> vector<8x32xf32>
    %180 = vector.broadcast %4 : vector<1x32xf32> to vector<8x32xf32>
    %181 = arith.addf %98, %180 : vector<8x32xf32>
    %182 = arith.truncf %179 : vector<8x32xf32> to vector<8x32xbf16>
    %cst_47 = arith.constant dense<0.000000e+00> : vector<8x32xf32>
    %183 = tpu.matmul %182, %3, %cst_47 {dimension_numbers = #tpu.dot_dimension_numbers<[1], [0], [0], [1], [0, 0, 1, 1], [], []>} : vector<8x32xbf16>, vector<32x32xbf16>, vector<8x32xf32> -> vector<8x32xf32>
    %184 = arith.addf %181, %183 : vector<8x32xf32>
    %185 = arith.truncf %184 : vector<8x32xf32> to vector<8x32xbf16>
    %cst_48 = arith.constant dense<0.000000e+00> : vector<8x32xf32>
    %186 = tpu.matmul %185, %5, %cst_48 {dimension_numbers = #tpu.dot_dimension_numbers<[1], [0], [0], [1], [0, 0, 1, 1], [], []>} : vector<8x32xbf16>, vector<32x32xbf16>, vector<8x32xf32> -> vector<8x32xf32>
    %187 = arith.addf %184, %186 : vector<8x32xf32>
    %188 = vector.shape_cast %96 : vector<8x32xf32> to vector<8x1x32xf32>
    %189 = vector.shape_cast %187 : vector<8x32xf32> to vector<8x1x32xf32>
    %190 = tpu.concatenate %188, %189 in 1 : vector<8x1x32xf32>, vector<8x1x32xf32> -> vector<8x2x32xf32>
    %c0_49 = arith.constant 0 : index
    %c0_50 = arith.constant 0 : index
    %c0_51 = arith.constant 0 : index
    %191 = vector.load %arg7[%c0_49, %c0_50, %c0_51] : memref<8x2x32xf32, #tpu.memory_space<vmem>>, vector<8x2x32xf32>
    tpu.vector_store %arg7[%c0_49, %c0_50, %c0_51], %190 {strides = array<i32>} : memref<8x2x32xf32, #tpu.memory_space<vmem>>, vector<8x2x32xf32>,
    return
  }
  func.func @transform_0(%arg0: i32) -> (i32, i32, i32) {
    %c0_i32 = arith.constant 0 : i32
    %c0_i32_0 = arith.constant 0 : i32
    %c0_i32_1 = arith.constant 0 : i32
    %c0_i32_2 = arith.constant 0 : i32
    return %c0_i32, %c0_i32_0, %c0_i32_1 : i32, i32, i32
  }
  func.func @transform_1(%arg0: i32) -> (i32, i32) {
    %c0_i32 = arith.constant 0 : i32
    %c0_i32_0 = arith.constant 0 : i32
    %c0_i32_1 = arith.constant 0 : i32
    return %c0_i32, %c0_i32_0 : i32, i32
  }
  func.func @transform_2(%arg0: i32) -> (i32, i32) {
    %c0_i32 = arith.constant 0 : i32
    %c0_i32_0 = arith.constant 0 : i32
    %c0_i32_1 = arith.constant 0 : i32
    return %c0_i32, %c0_i32_0 : i32, i32
  }
  func.func @transform_3(%arg0: i32) -> (i32, i32) {
    %c0_i32 = arith.constant 0 : i32
    %c0_i32_0 = arith.constant 0 : i32
    %c0_i32_1 = arith.constant 0 : i32
    return %c0_i32, %c0_i32_0 : i32, i32
  }
  func.func @transform_4(%arg0: i32) -> (i32, i32) {
    %c0_i32 = arith.constant 0 : i32
    %c0_i32_0 = arith.constant 0 : i32
    %c0_i32_1 = arith.constant 0 : i32
    return %c0_i32, %c0_i32_0 : i32, i32
  }
  func.func @transform_5(%arg0: i32) -> (i32, i32) {
    %c0_i32 = arith.constant 0 : i32
    %c0_i32_0 = arith.constant 0 : i32
    %c0_i32_1 = arith.constant 0 : i32
    return %c0_i32, %c0_i32_0 : i32, i32
  }
  func.func @transform_6(%arg0: i32) -> (i32, i32, i32) {
    %c0_i32 = arith.constant 0 : i32
    %c0_i32_0 = arith.constant 0 : i32
    %c0_i32_1 = arith.constant 0 : i32
    %c0_i32_2 = arith.constant 0 : i32
    return %c0_i32, %c0_i32_0, %c0_i32_1 : i32, i32, i32
  }
}

</mosaic_0001>

<bundles_post_ra>
// kernel: transformer_layer.1
= control target key start
LH: loop header
LB: loop body
LE: loop exit
PB: predicated region body
PF: predicated region fallthrough
CT: control target
= control target key end

     0   :  { %v1852_v1 = vmov 0.0   ;;  %vm1853_vm0 = vmmov 0   ;;  %vm78_vm1 = vcmask 1041409   ;;  %vm81_vm2 = vcmask 1042434   ;;  %s2427_s0 = inlined_call_operand.vmem [shape: f32[8,2,32], index: 0, kind: input, shape index: {}]   ;;  %s2428_s1 = inlined_call_operand.vmem [shape: bf16[32,96], index: 1, kind: input, shape index: {}]   ;;  %s2429_s2 = inlined_call_operand.vmem [shape: f32[1,96], index: 2, kind: input, shape index: {}]   ;;  %s2430_s3 = inlined_call_operand.vmem [shape: bf16[32,32], index: 3, kind: input, shape index: {}]   ;;  %s2431_s4 = inlined_call_operand.vmem [shape: f32[1,32], index: 4, kind: input, shape index: {}]   ;;  %s2432_s5 = inlined_call_operand.vmem [shape: bf16[32,32], index: 5, kind: input, shape index: {}]   ;;  %s2433_s6 = inlined_call_operand.hbm [shape: f32[8,2,32], index: 6, kind: output, shape index: {}]  }
   0x1   :  { %v1909_v0 = vld [vmem:[%s2428_s1] sm:$0xff]   ;;  %1627 = vmatprep.subr.bf16.mxu0 %v1852_v1  ;;  %v1915_v2 = vld [vmem:[%s2428_s1 + $0x8] sm:$0xff]   ;;  %1635 = vmatprep.subr.bf16.mxu1 %v1852_v1  ;;  %vm84_vm3 = vcmask 1043459   ;;  %vm87_vm4 = vcmask 1044484  }
   0x2   :  { %1628 = vmatpush3.bf16.msra.mxu0 %v1909_v0  ;;  %1631 = vmatprep.mubr.msk.bf16.mxu0 %vm1853_vm0, %v1852_v1  ;;  %v1924_v3 = vld [vmem:[%s2427_s0] sm:$0x3]  ;;  %v1929_v4 = vld [vmem:[%s2427_s0 + $0x2] sm:$0x3]  ;;  %v1934_v5 = vld [vmem:[%s2427_s0 + $0x4] sm:$0x3] }
   0x3   :  { %1629 = vmatprep.subr.bf16.mxu0 %v1852_v1  ;;  %v1940_v6 = vld [vmem:[%s2427_s0 + $0x6] sm:$0x3]  ;;  %v1945_v7 = vld [vmem:[%s2427_s0 + $0x8] sm:$0x3]  ;;  %v1950_v8 = vld [vmem:[%s2427_s0 + $0xa] sm:$0x3]  ;;  %v47_v9 = vpack.c.bf16 %v1924_v3, %v1924_v3  ;;  %v48_v10 = vpack.c.bf16 %v1929_v4, %v1929_v4  ;;  %v49_v11 = vpack.c.bf16 %v1934_v5, %v1934_v5  ;;  %1637 = vmatprep.mubr.msk.bf16.mxu1 %vm1853_vm0, %v1852_v1 }
   0x4   :  { %v1963_v12 = vld [vmem:[%s2427_s0 + $0xc] sm:$0x3]  ;;  %v1968_v13 = vld [vmem:[%s2427_s0 + $0xe] sm:$0x3]  ;;  %v50_v14 = vpack.c.bf16 %v1940_v6, %v1940_v6  ;;  %v51_v15 = vpack.c.bf16 %v1945_v7, %v1945_v7  ;;  %v52_v16 = vpack.c.bf16 %v1950_v8, %v1950_v8 }
   0x5   :  { %v53_v17 = vpack.c.bf16 %v1963_v12, %v1963_v12  ;;  %v54_v18 = vpack.c.bf16 %v1968_v13, %v1968_v13  ;;  %v1980_v19 = vunpack.c.l.b16 %v47_v9  ;;  %v1982_v20 = vunpack.c.l.b16 %v48_v10 }
   0x6   :  { %1630 = vmatpush3.bf16.msra.mxu0 %v1915_v2  ;;  %v1985_v21 = vunpack.c.l.b16 %v49_v11  ;;  %v1987_v22 = vunpack.c.l.b16 %v50_v14  ;;  %v1989_v23 = vunpack.c.l.b16 %v51_v15  ;;  %v1991_v24 = vunpack.c.l.b16 %v52_v16 }
   0x7   :  { %v1993_v25 = vunpack.c.l.b16 %v53_v17  ;;  %v1995_v26 = vunpack.c.l.b16 %v54_v18  ;;  %v77_v27 = vrot.slane %v1982_v20, 7  ;;  %1641 = vmatprep.subr.bf16.mxu0 %v1852_v1 }
   0x8   :  { %v80_v28 = vrot.slane %v1985_v21, 6  ;;  %v83_v29 = vrot.slane %v1987_v22, 5  ;;  %v86_v31 = vrot.slane %v1989_v23, 4  ;;  %v89_v32 = vrot.slane %v1991_v24, 3 }
   0x9   :  { %v79_v30 = vsel %vm78_vm1, %v77_v27, %v1980_v19 }
   0xa   :  { %11 = vsyncpa [#allocation3], 0  ;;  %v82_v33 = vsel %vm81_vm2, %v80_v28, %v79_v30  ;;  %vm90_vm5 = vcmask 1045509   ;;  %v92_v34 = vrot.slane %v1993_v25, 2  ;;  %vm93_vm6 = vcmask 1046534   ;;  %s1854_s17 = smov 120  }
   0xb   :  { %v85_v35 = vsel %vm84_vm3, %v83_v29, %v82_v33  ;;  %v95_v36 = vrot.slane %v1995_v26, 1  ;;  %vm96_vm7 = vcmask 1047559   ;;  %vm111_vm8 = vcmask 261120   ;;  %v2019_v42 = vld [vmem:[%s2429_s2] ss:$0 sm:$0xff]  ;;  %s1855_s18 = smov 96  }
   0xc   :  { %v88_v37 = vsel %vm87_vm4, %v86_v31, %v85_v35  ;;  %s1856_s19 = smov 80   ;;  %s1857_s2 = smov 88   ;;  %vm159_vm9 = vcmask 64512   ;;  %vm223_vm10 = vcmask 1043456   ;;  %vm610_vm11 = vcmask 130048  }
   0xd   :  { %v91_v38 = vsel %vm90_vm5, %v89_v32, %v88_v37  ;;  %s1858_s20 = smov 72   ;;  %s1859_s21 = smov 112   ;;  %vm612_vm12 = vcmask 195584   ;;  %vm1513_vm13 = vcmask 1040384   ;;  %vm1522_vm14 = vcmask 254976  }
   0xe   :  { %v94_v39 = vsel %vm93_vm6, %v92_v34, %v91_v38  ;;  %s1860_s22 = smov 104   ;;  %s1861_s23 = smov 56  }
   0xf   :  { %v97_v40 = vsel %vm96_vm7, %v95_v36, %v94_v39  ;;  %s1862_s24 = smov 64   ;;  %s1863_s25 = smov 40  }
  0x10   :  { %v98_v41 = vpack.c.b16 %v97_v40, %v97_v40  ;;  %s1864_s26 = smov 48   ;;  %s1865_s27 = smov 8  }
  0x11   :  { %s1867_s7 = smov 24  }
  0x12   :  { %1632 = vmatmul.mubr.msk.bf16.vlgmr.msra.gmra.mrb[0].mxu0 %vm111_vm8, %v98_v41 }
  0x13   :  { %1643 = vmatprep.mubr.msk.bf16.mxu0 %vm1853_vm0, %v1852_v1 }
  0xe5   :  { %v149_v43 = vpop.f32.mrb[0].mxu0 }
  0xe6   :  { %v150_v44 = vadd.f32 %v2019_v42, %v149_v43  ;;  %v1633_v45 = vpop.f32.mrb[1].mxu0 }
  0xe7   :  { %v152_v46 = vpop.f32.mrb[2].mxu0 }
  0xe8   :  { %v2022_v47 = vpack.c.bf16 %v150_v44, %v150_v44  ;;  %v1634_v48 = vpop.f32.mrb[3].mxu0 }
  0xea   :  { %267 = vrot.lane.b32.xlu1 %v2022_v47, %s1854_s17  ;;  %157 = vrot.lane.b32.xlu0 %v2022_v47, %s1855_s18 }
  0xee   :  { %379 = vrot.lane.b32.xlu1 %v2022_v47, %s1856_s19  ;;  %269 = vrot.lane.b32.xlu0 %v2022_v47, %s1857_s2 }
  0xf2   :  { %489 = vrot.lane.b32.xlu1 %v2022_v47, %s1858_s20  ;;  %377 = vrot.lane.b32.xlu0 %v2022_v47, %s1859_s21 }
  0xf6   :  { %487 = vrot.lane.b32.xlu0 %v2022_v47, %s1860_s22 }
 0x15c   :  { %v158_v49 = vpop.permute.xlu0 %157  ;;  %v268_v52 = vpop.permute.xlu1 %267 }
 0x15d   :  { %v164_v50 = vsel %vm159_vm9, %v158_v49, 0 }
 0x15e   :  { %1636 = vmatpush3.bf16.xpose.msra.mxu1 %v164_v50 }
 0x15f   :  { %1647 = vmatprep.subr.bf16.mxu1 %v1852_v1 }
 0x160   :  { %v270_v51 = vpop.permute.xlu0 %269  ;;  %v380_v54 = vpop.permute.xlu1 %379 }
 0x161   :  { %v275_v53 = vsel %vm159_vm9, %v270_v51, 0  ;;  %v385_v55 = vsel %vm159_vm9, %v380_v54, 0 }
 0x164   :  { %v490_v56 = vpop.permute.xlu1 %489  ;;  %v378_v57 = vpop.permute.xlu0 %377 }
 0x165   :  { %1638 = vmatmul.mubr.msk.bf16.vlgmr.msra.gmra.mrb[0].mxu1 %vm159_vm9, %v2022_v47  ;;  %v495_v58 = vsel %vm159_vm9, %v490_v56, 0 }
 0x166   :  { %1648 = vmatpush3.bf16.xpose.msra.mxu1 %v275_v53  ;;  %1649 = vmatprep.mubr.msk.bf16.mxu1 %vm1853_vm0, %v1852_v1 }
 0x167   :  { %1659 = vmatprep.subr.bf16.mxu1 %v1852_v1 }
 0x168   :  { %v488_v59 = vpop.permute.xlu0 %487 }
 0x16d   :  { %1650 = vmatmul.mubr.msk.bf16.vlgmr.msra.gmra.mrb[4].mxu1 %vm159_vm9, %v268_v52 }
 0x16e   :  { %1660 = vmatpush3.bf16.xpose.msra.mxu1 %v385_v55  ;;  %1661 = vmatprep.mubr.msk.bf16.mxu1 %vm1853_vm0, %v1852_v1 }
 0x16f   :  { %1671 = vmatprep.subr.bf16.mxu1 %v1852_v1 }
 0x175   :  { %1662 = vmatmul.mubr.msk.bf16.vlgmr.msra.gmra.mrb[8].mxu1 %vm159_vm9, %v378_v57 }
 0x176   :  { %1672 = vmatpush3.bf16.xpose.msra.mxu1 %v495_v58  ;;  %1673 = vmatprep.mubr.msk.bf16.mxu1 %vm1853_vm0, %v1852_v1 }
 0x177   :  { %1683 = vmatprep.subr.bf16.mxu1 %v1852_v1 }
 0x17d   :  { %1674 = vmatmul.mubr.msk.bf16.vlgmr.msra.gmra.mrb[12].mxu1 %vm159_vm9, %v488_v59 }
 0x17e   :  { %1687 = vmatprep.mubr.msk.bf16.mxu1 %vm1853_vm0, %v1852_v1 }
 0x238   :  { %v200_v60 = vpop.f32.mrb[0].mxu1 }
 0x239   :  { %v1639_v61 = vpop.f32.mrb[1].mxu1  ;;  %v206_v62 = vsel %vm159_vm9, %v200_v60, -inf }
 0x23a   :  { %207 = vmax.xlane.f32.xlu1 %v206_v62  ;;  %v203_v63 = vpop.f32.mrb[2].mxu1 }
 0x23b   :  { %v1640_v9 = vpop.f32.mrb[3].mxu1 }
 0x240   :  { %v311_v10 = vpop.f32.mrb[4].mxu1 }
 0x241   :  { %v1651_v11 = vpop.f32.mrb[5].mxu1  ;;  %v317_v14 = vsel %vm159_vm9, %v311_v10, -inf }
 0x242   :  { %318 = vmax.xlane.f32.xlu0 %v317_v14  ;;  %v314_v15 = vpop.f32.mrb[6].mxu1 }
 0x243   :  { %v1652_v16 = vpop.f32.mrb[7].mxu1 }
 0x248   :  { %v421_v17 = vpop.f32.mrb[8].mxu1 }
 0x249   :  { %v1663_v18 = vpop.f32.mrb[9].mxu1  ;;  %v427_v27 = vsel %vm159_vm9, %v421_v17, -inf }
 0x24a   :  { %428 = vmax.xlane.f32.xlu0 %v427_v27  ;;  %v424_v28 = vpop.f32.mrb[10].mxu1 }
 0x24b   :  { %v1664_v29 = vpop.f32.mrb[11].mxu1 }
 0x250   :  { %v531_v30 = vpop.f32.mrb[12].mxu1 }
 0x251   :  { %v1675_v31 = vpop.f32.mrb[13].mxu1  ;;  %v537_v32 = vsel %vm159_vm9, %v531_v30, -inf }
 0x252   :  { %538 = vmax.xlane.f32.xlu1 %v537_v32  ;;  %v534_v33 = vpop.f32.mrb[14].mxu1 }
 0x253   :  { %v1676_v34 = vpop.f32.mrb[15].mxu1 }
 0x2c7   :  { %v208_v35 = vpop.xlane.xlu1 %207 }
 0x2c8   :  { %v209_v36 = vsub.f32 %v200_v60, %v208_v35 }
 0x2ca   :  { %v210_v37 = vmul.f32 1.442695, %v209_v36 }
 0x2cc   :  { %1796 = vpow2.f32 %v210_v37 }
 0x2cf   :  { %v319_v38 = vpop.xlane.xlu0 %318 }
 0x2d0   :  { %v320_v39 = vsub.f32 %v311_v10, %v319_v38 }
 0x2d2   :  { %v321_v40 = vmul.f32 1.442695, %v320_v39 }
 0x2d4   :  { %1798 = vpow2.f32 %v321_v40 }
 0x2d6   :  { %v1797_v41 = vpop.eup %1796 }
 0x2d7   :  { %v429_v43 = vpop.xlane.xlu0 %428  ;;  %v212_v44 = vsel %vm159_vm9, %v1797_v41, 0.0 }
 0x2d8   :  { %v430_v45 = vsub.f32 %v421_v17, %v429_v43  ;;  %213 = vadd.xlane.f32.xlu0 %v212_v44  ;;  %v2099_v44 = vld [vmem:[%s2430_s3] sm:$0xff]  }
 0x2d9   :  { %1684 = vmatpush3.bf16.msra.mxu1 %v2099_v44 }
 0x2da   :  { %v431_v46 = vmul.f32 1.442695, %v430_v45  ;;  %1685 = vmatprep.subr.bf16.mxu1 %v1852_v1  ;;  %v826_v45 = vrot.slane %v1980_v19, 1 }
 0x2dc   :  { %1800 = vpow2.f32 %v431_v46  ;;  %v2107_v46 = vld [vmem:[%s2430_s3 + $0x8] sm:$0xff]   ;;  %v827_v19 = vsel %vm78_vm1, %v1982_v20, %v826_v45  ;;  %s1866_s3 = smov 16  }
 0x2dd   :  { %1686 = vmatpush3.bf16.msra.mxu1 %v2107_v46 }
 0x2de   :  { %v1799_v48 = vpop.eup %1798  ;;  %1699 = vmatprep.subr.bf16.mxu1 %v1852_v1 }
 0x2df   :  { %v323_v49 = vsel %vm159_vm9, %v1799_v48, 0.0  ;;  %v539_v52 = vpop.xlane.xlu1 %538 }
 0x2e0   :  { %324 = vadd.xlane.f32.xlu1 %v323_v49  ;;  %v540_v53 = vsub.f32 %v531_v30, %v539_v52  ;;  %v830_v49 = vrot.slane %v1987_v22, 6  ;;  %v836_v52 = vrot.slane %v1993_v25, 3 }
 0x2e2   :  { %v541_v54 = vmul.f32 1.442695, %v540_v53 }
 0x2e4   :  { %1802 = vpow2.f32 %v541_v54  ;;  %v838_v54 = vrot.slane %v1995_v26, 2 }
 0x2e6   :  { %v1801_v50 = vpop.eup %1800 }
 0x2e7   :  { %v433_v51 = vsel %vm159_vm9, %v1801_v50, 0.0 }
 0x2e8   :  { %434 = vadd.xlane.f32.xlu0 %v433_v51  ;;  %v834_v51 = vrot.slane %v1991_v24, 4 }
 0x2ee   :  { %v1803_v55 = vpop.eup %1802 }
 0x2ef   :  { %v543_v56 = vsel %vm159_vm9, %v1803_v55, 0.0 }
 0x2f1   :  { %329 = vrot.lane.b32.xlu1 %v2022_v47, %s1861_s23 }
 0x2fe   :  { %218 = vrot.lane.b32.xlu0 %v2022_v47, %s1862_s24 }
 0x302   :  { %549 = vrot.lane.b32.xlu0 %v2022_v47, %s1863_s25 }
 0x315   :  { %544 = vadd.xlane.f32.xlu1 %v543_v56 }
 0x326   :  { %439 = vrot.lane.b32.xlu1 %v2022_v47, %s1864_s26 }
 0x365   :  { %v214_v57 = vpop.xlane.xlu0 %213 }
 0x366   :  { %1804 = vrcp.f32 %v214_v57 }
 0x36d   :  { %v325_v58 = vpop.xlane.xlu1 %324 }
 0x36e   :  { %1806 = vrcp.f32 %v325_v58 }
 0x370   :  { %v1805_v59 = vpop.eup %1804 }
 0x371   :  { %v216_v61 = vmul.f32 %v1805_v59, %v1797_v41  ;;  %v330_v9 = vpop.permute.xlu1 %329 }
 0x372   :  { %v335_v14 = vsel %vm223_vm10, %v330_v9, 0 }
 0x373   :  { %v217_v10 = vpack.c.bf16 %v216_v61, %v216_v61 }
 0x375   :  { %v435_v60 = vpop.xlane.xlu0 %434 }
 0x376   :  { %1808 = vrcp.f32 %v435_v60 }
 0x378   :  { %v1807_v11 = vpop.eup %1806 }
 0x379   :  { %v219_v62 = vpop.permute.xlu0 %218  ;;  %v327_v47 = vmul.f32 %v1807_v11, %v1799_v48  ;;  %v828_v48 = vrot.slane %v1985_v21, 7 }
 0x37a   :  { %v225_v63 = vsel %vm223_vm10, %v219_v62, 0 }
 0x37b   :  { %1642 = vmatpush3.bf16.msra.mxu0 %v225_v63  ;;  %v328_v15 = vpack.c.bf16 %v327_v47, %v327_v47  ;;  %v829_v53 = vsel %vm81_vm2, %v828_v48, %v827_v19 }
 0x37c   :  { %1653 = vmatprep.subr.bf16.mxu0 %v1852_v1  ;;  %v831_v22 = vsel %vm84_vm3, %v830_v49, %v829_v53 }
 0x37d   :  { %v550_v29 = vpop.permute.xlu0 %549 }
 0x37e   :  { %1644 = vmatmul.mubr.msk.bf16.vlgmr.msra.gmra.mrb[4].mxu0 %vm159_vm9, %v217_v10  ;;  %v555_v31 = vsel %vm223_vm10, %v550_v29, 0 }
 0x37f   :  { %1654 = vmatpush3.bf16.msra.mxu0 %v335_v14  ;;  %1655 = vmatprep.mubr.msk.bf16.mxu0 %vm1853_vm0, %v1852_v1 }
 0x380   :  { %1665 = vmatprep.subr.bf16.mxu0 %v1852_v1  ;;  %v1809_v16 = vpop.eup %1808 }
 0x381   :  { %v437_v18 = vmul.f32 %v1809_v16, %v1801_v50  ;;  %v832_v50 = vrot.slane %v1989_v23, 5 }
 0x383   :  { %v438_v30 = vpack.c.bf16 %v437_v18, %v437_v18 }
 0x386   :  { %1656 = vmatmul.mubr.msk.bf16.vlgmr.msra.gmra.mrb[8].mxu0 %vm159_vm9, %v328_v15  ;;  %v2143_v15 = vld [vmem:[%s2432_s5] sm:$0xff]  }
 0x387   :  { %1667 = vmatprep.mubr.msk.bf16.mxu0 %vm1853_vm0, %v1852_v1 }
 0x3a2   :  { %v545_v17 = vpop.xlane.xlu1 %544 }
 0x3a3   :  { %1810 = vrcp.f32 %v545_v17 }
 0x3a6   :  { %v440_v27 = vpop.permute.xlu1 %439 }
 0x3a7   :  { %v445_v28 = vsel %vm223_vm10, %v440_v27, 0 }
 0x3a8   :  { %1666 = vmatpush3.bf16.msra.mxu0 %v445_v28 }
 0x3a9   :  { %1677 = vmatprep.subr.bf16.mxu0 %v1852_v1 }
 0x3ab   :  { %1668 = vmatmul.mubr.msk.bf16.vlgmr.msra.gmra.mrb[12].mxu0 %vm159_vm9, %v438_v30 }
 0x3ac   :  { %1678 = vmatpush3.bf16.msra.mxu0 %v555_v31  ;;  %1679 = vmatprep.mubr.msk.bf16.mxu0 %vm1853_vm0, %v1852_v1 }
 0x3ad   :  { %v1811_v32 = vpop.eup %1810  ;;  %1691 = vmatprep.subr.bf16.mxu0 %v1852_v1 }
 0x3ae   :  { %v547_v33 = vmul.f32 %v1811_v32, %v1803_v55  ;;  %v833_v55 = vsel %vm87_vm4, %v832_v50, %v831_v22 }
 0x3af   :  { %v835_v24 = vsel %vm90_vm5, %v834_v51, %v833_v55 }
 0x3b0   :  { %v548_v34 = vpack.c.bf16 %v547_v33, %v547_v33  ;;  %v837_v20 = vsel %vm93_vm6, %v836_v52, %v835_v24 }
 0x3b1   :  { %v839_v25 = vsel %vm96_vm7, %v838_v54, %v837_v20 }
 0x3b2   :  { %v840_v47 = vpack.c.b16 %v839_v25, %v839_v25 }
 0x3b3   :  { %1680 = vmatmul.mubr.msk.bf16.vlgmr.msra.gmra.mrb[16].mxu0 %vm159_vm9, %v548_v34 }
 0x3b4   :  { %1695 = vmatprep.mubr.msk.bf16.mxu0 %vm1853_vm0, %v1852_v1  ;;  %1692 = vmatpush3.bf16.msra.mxu0 %v2143_v15 }
 0x3b5   :  { %1693 = vmatprep.subr.bf16.mxu0 %v1852_v1 }
 0x451   :  { %v261_v35 = vpop.f32.mrb[4].mxu0 }
 0x452   :  { %v1645_v36 = vpop.f32.mrb[5].mxu0 }
 0x453   :  { %v264_v37 = vpop.f32.mrb[6].mxu0 }
 0x454   :  { %v1646_v38 = vpop.f32.mrb[7].mxu0 }
 0x459   :  { %v371_v39 = vpop.f32.mrb[8].mxu0 }
 0x45a   :  { %598 = vrot.lane.b32.xlu1 %v371_v39, %s1865_s27  ;;  %v1657_v40 = vpop.f32.mrb[9].mxu0 }
 0x45b   :  { %v374_v41 = vpop.f32.mrb[10].mxu0 }
 0x45c   :  { %v1658_v43 = vpop.f32.mrb[11].mxu0 }
 0x47e   :  { %v481_v21 = vpop.f32.mrb[12].mxu0 }
 0x47f   :  { %602 = vrot.lane.b32.xlu0 %v481_v21, %s1866_s3  ;;  %v1669_v23 = vpop.f32.mrb[13].mxu0 }
 0x480   :  { %v484_v56 = vpop.f32.mrb[14].mxu0 }
 0x481   :  { %v1670_v57 = vpop.f32.mrb[15].mxu0 }
 0x486   :  { %v591_v58 = vpop.f32.mrb[16].mxu0 }
 0x487   :  { %606 = vrot.lane.b32.xlu1 %v591_v58, %s1867_s7  ;;  %v1681_v26 = vpop.f32.mrb[17].mxu0 }
 0x488   :  { %v594_v59 = vpop.f32.mrb[18].mxu0 }
 0x489   :  { %v1682_v60 = vpop.f32.mrb[19].mxu0 }
 0x4cc   :  { %v599_v61 = vpop.permute.xlu1 %598 }
 0x4cd   :  { %v609_v63 = vsel %vm159_vm9, %v261_v35, %v599_v61 }
 0x4f1   :  { %v603_v62 = vpop.permute.xlu0 %602 }
 0x4f2   :  { %v611_v9 = vsel %vm610_vm11, %v609_v63, %v603_v62 }
 0x4f9   :  { %v607_v10 = vpop.permute.xlu1 %606 }
 0x4fa   :  { %v613_v11 = vsel %vm612_vm12, %v611_v9, %v607_v10 }
 0x4fb   :  { %v628_v14 = vpack.c.bf16 %v613_v11, %v613_v11 }
 0x4fd   :  { %1688 = vmatmul.mubr.msk.bf16.vlgmr.msra.gmra.mrb[16].mxu1 %vm111_vm8, %v628_v14 }
 0x4fe   :  { %1700 = vmatpush3.bf16.msra.mxu1 %v1909_v0  ;;  %1703 = vmatprep.mubr.msk.bf16.mxu1 %vm1853_vm0, %v1852_v1  ;;  %v2149_v0 = vld [vmem:[%s2432_s5 + $0x8] sm:$0xff]  }
 0x4ff   :  { %1701 = vmatprep.subr.bf16.mxu1 %v1852_v1  ;;  %1694 = vmatpush3.bf16.msra.mxu0 %v2149_v0 }
 0x500   :  { %1707 = vmatprep.subr.bf16.mxu0 %v1852_v1 }
 0x502   :  { %1702 = vmatpush3.bf16.msra.mxu1 %v1915_v2  ;;  %v1559_v2 = vld [vmem:[%s2431_s4] ss:$0 sm:$0xff]  ;;  %s1868_s4 = smov [#allocation2]  }
 0x503   :  { %1713 = vmatprep.subr.bf16.mxu1 %v1852_v1  ;;  %v2158_v16 = vadd.f32 %v1559_v2, %v1924_v3  ;;  %v2161_v17 = vadd.f32 %v1559_v2, %v1945_v7  ;;  %v2164_v18 = vadd.f32 %v1559_v2, %v1929_v4  ;;  %v2167_v27 = vadd.f32 %v1559_v2, %v1934_v5  ;;  %s1536_s5 = sshll.u32 %s1868_s4, 4  ;;  %s2393_s5 = int_to_ptr.vmem [resolvable:$true] %s1536_s5 }
 0x504   :  { %v2170_v28 = vadd.f32 %v1559_v2, %v1940_v6  ;;  %v2173_v29 = vadd.f32 %v1559_v2, %v1950_v8  ;;  %v2176_v30 = vadd.f32 %v1559_v2, %v1963_v12  ;;  %v2179_v3 = vadd.f32 %v1559_v2, %v1968_v13  ;;  %s1828_s14 = scalar_lea.vmem %s2393_s5, 256  ;;  %p1833_p1 = scmp.lt.s32.totalorder %s2393_s5, %s2393_s5 }
 0x505   :  { %1704 = vmatmul.mubr.msk.bf16.vlgmr.msra.gmra.mrb[20].mxu1 %vm111_vm8, %v840_v47  ;;  %p1829_p0 = scmp.ne.s32.totalorder %s2393_s5, %s1828_s14  ;;  %p1834_p2 = scmp.lt.s32.totalorder %s1828_s14, %s1828_s14 }
 0x506   :  { %1715 = vmatprep.mubr.msk.bf16.mxu1 %vm1853_vm0, %v1852_v1 }
 0x507   :  { %p1835_p3 = por %p1834_p2, %p1833_p1 }
 0x509   :  { %p1836_p4 = pnand %p1835_p3, %p1829_p0 }
 0x5d0   :  { %v678_v7 = vpop.f32.mrb[16].mxu1 }
 0x5d1   :  { %v685_v31 = vrot.slane %v678_v7, 1  ;;  %v686_v32 = vrot.slane %v678_v7, 2  ;;  %v687_v4 = vrot.slane %v678_v7, 3  ;;  %v688_v33 = vrot.slane %v678_v7, 4  ;;  %v1689_v34 = vpop.f32.mrb[17].mxu1 }
 0x5d2   :  { %v689_v5 = vrot.slane %v678_v7, 5  ;;  %v690_v35 = vrot.slane %v678_v7, 6  ;;  %v691_v36 = vrot.slane %v678_v7, 7  ;;  %v2182_v6 = vadd.f32 %v678_v7, %v2158_v16  ;;  %v681_v8 = vpop.f32.mrb[18].mxu1 }
 0x5d3   :  { %v2185_v37 = vadd.f32 %v685_v31, %v2164_v18  ;;  %v2188_v12 = vadd.f32 %v686_v32, %v2167_v27  ;;  %v2191_v13 = vadd.f32 %v687_v4, %v2170_v28  ;;  %v2194_v38 = vadd.f32 %v688_v33, %v2161_v17  ;;  %v1690_v39 = vpop.f32.mrb[19].mxu1 }
 0x5d4   :  { %v2197_v40 = vadd.f32 %v689_v5, %v2173_v29  ;;  %v2200_v41 = vadd.f32 %v690_v35, %v2176_v30  ;;  %v708_v43 = vpack.c.bf16 %v2182_v6, %v2182_v6  ;;  %v2205_v45 = vadd.f32 %v691_v36, %v2179_v3 }
 0x5d5   :  { %v709_v48 = vpack.c.bf16 %v2185_v37, %v2185_v37  ;;  %v710_v49 = vpack.c.bf16 %v2188_v12, %v2188_v12  ;;  %v711_v50 = vpack.c.bf16 %v2191_v13, %v2191_v13  ;;  %v712_v51 = vpack.c.bf16 %v2194_v38, %v2194_v38 }
 0x5d6   :  { %v713_v19 = vpack.c.bf16 %v2197_v40, %v2197_v40  ;;  %v714_v52 = vpack.c.bf16 %v2200_v41, %v2200_v41  ;;  %v715_v22 = vpack.c.bf16 %v2205_v45, %v2205_v45  ;;  %v724_v23 = vunpack.c.l.b16 %v708_v43 }
 0x5d7   :  { %v725_v53 = vunpack.c.l.b16 %v709_v48  ;;  %v726_v54 = vunpack.c.l.b16 %v710_v49  ;;  %v727_v21 = vunpack.c.l.b16 %v711_v50  ;;  %v728_v56 = vunpack.c.l.b16 %v712_v51 }
 0x5d8   :  { %v878_v55 = vpop.f32.mrb[20].mxu1  ;;  %v729_v58 = vunpack.c.l.b16 %v713_v19  ;;  %v730_v59 = vunpack.c.l.b16 %v714_v52  ;;  %v731_v63 = vunpack.c.l.b16 %v715_v22 }
 0x5d9   :  { %v732_v24 = vrot.slane %v725_v53, 7  ;;  %v734_v57 = vrot.slane %v726_v54, 6  ;;  %v879_v20 = vadd.f32 %v2019_v42, %v878_v55  ;;  %v1705_v25 = vpop.f32.mrb[21].mxu1  ;;  %v736_v60 = vrot.slane %v727_v21, 5 }
 0x5da   :  { %v881_v26 = vpop.f32.mrb[22].mxu1  ;;  %v738_v11 = vrot.slane %v728_v56, 4  ;;  %v740_v14 = vrot.slane %v729_v58, 3  ;;  %v742_v2 = vrot.slane %v730_v59, 2  ;;  %v744_v31 = vrot.slane %v731_v63, 1 }
 0x5db   :  { %v2222_v61 = vpack.c.bf16 %v879_v20, %v879_v20  ;;  %v1706_v62 = vpop.f32.mrb[23].mxu1  ;;  %v733_v9 = vsel %vm78_vm1, %v732_v24, %v724_v23 }
 0x5dc   :  { %v735_v10 = vsel %vm81_vm2, %v734_v57, %v733_v9 }
 0x5dd   :  { %996 = vrot.lane.b32.xlu1 %v2222_v61, %s1857_s2  ;;  %886 = vrot.lane.b32.xlu0 %v2222_v61, %s1855_s18  ;;  %v737_v42 = vsel %vm84_vm3, %v736_v60, %v735_v10 }
 0x5de   :  { %v739_v47 = vsel %vm87_vm4, %v738_v11, %v737_v42 }
 0x5df   :  { %v741_v7 = vsel %vm90_vm5, %v740_v14, %v739_v47 }
 0x5e0   :  { %v743_v32 = vsel %vm93_vm6, %v742_v2, %v741_v7 }
 0x5e1   :  { %1106 = vrot.lane.b32.xlu1 %v2222_v61, %s1856_s19  ;;  %994 = vrot.lane.b32.xlu0 %v2222_v61, %s1854_s17  ;;  %v745_v4 = vsel %vm96_vm7, %v744_v31, %v743_v32 }
 0x5e2   :  { %v746_v33 = vpack.c.b16 %v745_v4, %v745_v4 }
 0x5e4   :  { %1696 = vmatmul.mubr.msk.bf16.vlgmr.msra.gmra.mrb[20].mxu0 %vm111_vm8, %v746_v33 }
 0x5e5   :  { %1216 = vrot.lane.b32.xlu1 %v2222_v61, %s1858_s20  ;;  %1104 = vrot.lane.b32.xlu0 %v2222_v61, %s1859_s21 }
 0x5e6   :  { %1709 = vmatprep.mubr.msk.bf16.mxu0 %vm1853_vm0, %v1852_v1 }
 0x5e9   :  { %1214 = vrot.lane.b32.xlu0 %v2222_v61, %s1860_s22 }
 0x64f   :  { %v887_v34 = vpop.permute.xlu0 %886  ;;  %v997_v35 = vpop.permute.xlu1 %996 }
 0x650   :  { %v892_v5 = vsel %vm159_vm9, %v887_v34, 0  ;;  %v1002_v36 = vsel %vm159_vm9, %v997_v35, 0 }
 0x651   :  { %1708 = vmatpush3.bf16.xpose.msra.mxu0 %v892_v5 }
 0x652   :  { %1719 = vmatprep.subr.bf16.mxu0 %v1852_v1 }
 0x653   :  { %v1107_v8 = vpop.permute.xlu1 %1106  ;;  %v995_v39 = vpop.permute.xlu0 %994 }
 0x654   :  { %v1112_v43 = vsel %vm159_vm9, %v1107_v8, 0 }
 0x657   :  { %v1217_v48 = vpop.permute.xlu1 %1216  ;;  %v1105_v49 = vpop.permute.xlu0 %1104 }
 0x658   :  { %1710 = vmatmul.mubr.msk.bf16.vlgmr.msra.gmra.mrb[24].mxu0 %vm159_vm9, %v2222_v61  ;;  %v1222_v50 = vsel %vm159_vm9, %v1217_v48, 0 }
 0x659   :  { %1720 = vmatpush3.bf16.xpose.msra.mxu0 %v1002_v36  ;;  %1721 = vmatprep.mubr.msk.bf16.mxu0 %vm1853_vm0, %v1852_v1 }
 0x65a   :  { %1731 = vmatprep.subr.bf16.mxu0 %v1852_v1 }
 0x65b   :  { %v1215_v51 = vpop.permute.xlu0 %1214 }
 0x660   :  { %1722 = vmatmul.mubr.msk.bf16.vlgmr.msra.gmra.mrb[28].mxu0 %vm159_vm9, %v995_v39 }
 0x661   :  { %1732 = vmatpush3.bf16.xpose.msra.mxu0 %v1112_v43  ;;  %1733 = vmatprep.mubr.msk.bf16.mxu0 %vm1853_vm0, %v1852_v1 }
 0x662   :  { %1743 = vmatprep.subr.bf16.mxu0 %v1852_v1 }
 0x668   :  { %1734 = vmatmul.mubr.msk.bf16.vlgmr.msra.gmra.mrb[32].mxu0 %vm159_vm9, %v1105_v49 }
 0x669   :  { %1744 = vmatpush3.bf16.xpose.msra.mxu0 %v1222_v50  ;;  %1745 = vmatprep.mubr.msk.bf16.mxu0 %vm1853_vm0, %v1852_v1 }
 0x66a   :  { %1755 = vmatprep.subr.bf16.mxu0 %v1852_v1 }
 0x670   :  { %1746 = vmatmul.mubr.msk.bf16.vlgmr.msra.gmra.mrb[36].mxu0 %vm159_vm9, %v1215_v51 }
 0x671   :  { %1756 = vmatpush3.bf16.msra.mxu0 %v2099_v44  ;;  %1759 = vmatprep.mubr.msk.bf16.mxu0 %vm1853_vm0, %v1852_v1 }
 0x672   :  { %1757 = vmatprep.subr.bf16.mxu0 %v1852_v1 }
 0x675   :  { %1758 = vmatpush3.bf16.msra.mxu0 %v2107_v46 }
 0x6b7   :  { %v2272_v19 = vpop.f32.mrb[20].mxu0 }
 0x6b8   :  { %v1697_v52 = vpop.f32.mrb[21].mxu0 }
 0x6b9   :  { %v799_v53 = vpop.f32.mrb[22].mxu0 }
 0x6ba   :  { %v1698_v54 = vpop.f32.mrb[23].mxu0 }
 0x72b   :  { %v928_v21 = vpop.f32.mrb[24].mxu0 }
 0x72c   :  { %v1711_v22 = vpop.f32.mrb[25].mxu0  ;;  %v934_v23 = vsel %vm159_vm9, %v928_v21, -inf }
 0x72d   :  { %935 = vmax.xlane.f32.xlu1 %v934_v23  ;;  %v931_v55 = vpop.f32.mrb[26].mxu0 }
 0x72e   :  { %v1712_v56 = vpop.f32.mrb[27].mxu0 }
 0x733   :  { %v1038_v44 = vpop.f32.mrb[28].mxu0 }
 0x734   :  { %v1723_v24 = vpop.f32.mrb[29].mxu0  ;;  %v1044_v57 = vsel %vm159_vm9, %v1038_v44, -inf }
 0x735   :  { %1045 = vmax.xlane.f32.xlu0 %v1044_v57  ;;  %v1041_v20 = vpop.f32.mrb[30].mxu0 }
 0x736   :  { %v1724_v25 = vpop.f32.mrb[31].mxu0 }
 0x73b   :  { %v1148_v46 = vpop.f32.mrb[32].mxu0 }
 0x73c   :  { %v1735_v58 = vpop.f32.mrb[33].mxu0  ;;  %v1154_v26 = vsel %vm159_vm9, %v1148_v46, -inf }
 0x73d   :  { %1155 = vmax.xlane.f32.xlu0 %v1154_v26  ;;  %v1151_v59 = vpop.f32.mrb[34].mxu0 }
 0x73e   :  { %v1736_v60 = vpop.f32.mrb[35].mxu0 }
 0x743   :  { %v1258_v62 = vpop.f32.mrb[36].mxu0 }
 0x744   :  { %v1747_v63 = vpop.f32.mrb[37].mxu0  ;;  %v1264_v9 = vsel %vm159_vm9, %v1258_v62, -inf }
 0x745   :  { %1265 = vmax.xlane.f32.xlu1 %v1264_v9  ;;  %v1261_v10 = vpop.f32.mrb[38].mxu0 }
 0x746   :  { %v1748_v11 = vpop.f32.mrb[39].mxu0 }
 0x7ba   :  { %v936_v42 = vpop.xlane.xlu1 %935 }
 0x7bb   :  { %v937_v14 = vsub.f32 %v928_v21, %v936_v42 }
 0x7bd   :  { %v938_v47 = vmul.f32 1.442695, %v937_v14 }
 0x7bf   :  { %1812 = vpow2.f32 %v938_v47 }
 0x7c2   :  { %v1046_v2 = vpop.xlane.xlu0 %1045 }
 0x7c3   :  { %v1047_v7 = vsub.f32 %v1038_v44, %v1046_v2 }
 0x7c5   :  { %v1048_v31 = vmul.f32 1.442695, %v1047_v7 }
 0x7c7   :  { %1814 = vpow2.f32 %v1048_v31 }
 0x7c9   :  { %v1813_v32 = vpop.eup %1812 }
 0x7ca   :  { %v1156_v4 = vpop.xlane.xlu0 %1155  ;;  %v940_v33 = vsel %vm159_vm9, %v1813_v32, 0.0 }
 0x7cb   :  { %v1157_v34 = vsub.f32 %v1148_v46, %v1156_v4  ;;  %941 = vadd.xlane.f32.xlu0 %v940_v33 }
 0x7cd   :  { %v1158_v5 = vmul.f32 1.442695, %v1157_v34 }
 0x7cf   :  { %1816 = vpow2.f32 %v1158_v5 }
 0x7d1   :  { %v1815_v35 = vpop.eup %1814 }
 0x7d2   :  { %v1050_v36 = vsel %vm159_vm9, %v1815_v35, 0.0  ;;  %v1266_v43 = vpop.xlane.xlu1 %1265 }
 0x7d3   :  { %1051 = vadd.xlane.f32.xlu1 %v1050_v36  ;;  %v1267_v48 = vsub.f32 %v1258_v62, %v1266_v43 }
 0x7d5   :  { %v1268_v49 = vmul.f32 1.442695, %v1267_v48 }
 0x7d7   :  { %1818 = vpow2.f32 %v1268_v49 }
 0x7d9   :  { %v1817_v8 = vpop.eup %1816 }
 0x7da   :  { %v1160_v39 = vsel %vm159_vm9, %v1817_v8, 0.0 }
 0x7db   :  { %1161 = vadd.xlane.f32.xlu0 %v1160_v39 }
 0x7e1   :  { %v1819_v50 = vpop.eup %1818 }
 0x7e2   :  { %v1270_v51 = vsel %vm159_vm9, %v1819_v50, 0.0 }
 0x7e4   :  { %1056 = vrot.lane.b32.xlu1 %v2222_v61, %s1861_s23 }
 0x7f1   :  { %946 = vrot.lane.b32.xlu0 %v2222_v61, %s1862_s24 }
 0x7f5   :  { %1276 = vrot.lane.b32.xlu0 %v2222_v61, %s1863_s25 }
 0x808   :  { %1271 = vadd.xlane.f32.xlu1 %v1270_v51 }
 0x819   :  { %1166 = vrot.lane.b32.xlu1 %v2222_v61, %s1864_s26 }
 0x858   :  { %v942_v52 = vpop.xlane.xlu0 %941 }
 0x859   :  { %1820 = vrcp.f32 %v942_v52 }
 0x860   :  { %v1052_v53 = vpop.xlane.xlu1 %1051 }
 0x861   :  { %1822 = vrcp.f32 %v1052_v53 }
 0x863   :  { %v1821_v54 = vpop.eup %1820 }
 0x864   :  { %v944_v22 = vmul.f32 %v1821_v54, %v1813_v32  ;;  %v1057_v56 = vpop.permute.xlu1 %1056 }
 0x865   :  { %v1062_v57 = vsel %vm223_vm10, %v1057_v56, 0 }
 0x866   :  { %v945_v44 = vpack.c.bf16 %v944_v22, %v944_v22 }
 0x868   :  { %v1162_v21 = vpop.xlane.xlu0 %1161 }
 0x869   :  { %1824 = vrcp.f32 %v1162_v21 }
 0x86b   :  { %v1823_v24 = vpop.eup %1822 }
 0x86c   :  { %v947_v23 = vpop.permute.xlu0 %946  ;;  %v1054_v61 = vmul.f32 %v1823_v24, %v1815_v35 }
 0x86d   :  { %v952_v55 = vsel %vm223_vm10, %v947_v23, 0 }
 0x86e   :  { %1714 = vmatpush3.bf16.msra.mxu1 %v952_v55  ;;  %v1055_v20 = vpack.c.bf16 %v1054_v61, %v1054_v61 }
 0x86f   :  { %1725 = vmatprep.subr.bf16.mxu1 %v1852_v1 }
 0x870   :  { %v1277_v60 = vpop.permute.xlu0 %1276 }
 0x871   :  { %1716 = vmatmul.mubr.msk.bf16.vlgmr.msra.gmra.mrb[24].mxu1 %vm159_vm9, %v945_v44  ;;  %v1282_v63 = vsel %vm223_vm10, %v1277_v60, 0 }
 0x872   :  { %1726 = vmatpush3.bf16.msra.mxu1 %v1062_v57  ;;  %1727 = vmatprep.mubr.msk.bf16.mxu1 %vm1853_vm0, %v1852_v1 }
 0x873   :  { %1737 = vmatprep.subr.bf16.mxu1 %v1852_v1  ;;  %v1825_v25 = vpop.eup %1824 }
 0x874   :  { %v1164_v58 = vmul.f32 %v1825_v25, %v1817_v8 }
 0x876   :  { %v1165_v62 = vpack.c.bf16 %v1164_v58, %v1164_v58 }
 0x879   :  { %1728 = vmatmul.mubr.msk.bf16.vlgmr.msra.gmra.mrb[28].mxu1 %vm159_vm9, %v1055_v20 }
 0x87a   :  { %1739 = vmatprep.mubr.msk.bf16.mxu1 %vm1853_vm0, %v1852_v1 }
 0x895   :  { %v1272_v46 = vpop.xlane.xlu1 %1271 }
 0x896   :  { %1826 = vrcp.f32 %v1272_v46 }
 0x899   :  { %v1167_v26 = vpop.permute.xlu1 %1166 }
 0x89a   :  { %v1172_v59 = vsel %vm223_vm10, %v1167_v26, 0 }
 0x89b   :  { %1738 = vmatpush3.bf16.msra.mxu1 %v1172_v59 }
 0x89c   :  { %1749 = vmatprep.subr.bf16.mxu1 %v1852_v1 }
 0x89e   :  { %1740 = vmatmul.mubr.msk.bf16.vlgmr.msra.gmra.mrb[32].mxu1 %vm159_vm9, %v1165_v62 }
 0x89f   :  { %1750 = vmatpush3.bf16.msra.mxu1 %v1282_v63  ;;  %1751 = vmatprep.mubr.msk.bf16.mxu1 %vm1853_vm0, %v1852_v1 }
 0x8a0   :  { %v1827_v9 = vpop.eup %1826  ;;  %1763 = vmatprep.subr.bf16.mxu1 %v1852_v1 }
 0x8a1   :  { %v1274_v10 = vmul.f32 %v1827_v9, %v1819_v50 }
 0x8a3   :  { %v1275_v11 = vpack.c.bf16 %v1274_v10, %v1274_v10 }
 0x8a6   :  { %1752 = vmatmul.mubr.msk.bf16.vlgmr.msra.gmra.mrb[36].mxu1 %vm159_vm9, %v1275_v11 }
 0x8a7   :  { %1764 = vmatpush3.bf16.msra.mxu1 %v2143_v15  ;;  %1767 = vmatprep.mubr.msk.bf16.mxu1 %vm1853_vm0, %v1852_v1 }
 0x8a8   :  { %1765 = vmatprep.subr.bf16.mxu1 %v1852_v1 }
 0x8ab   :  { %1766 = vmatpush3.bf16.msra.mxu1 %v2149_v0 }
 0x944   :  { %v988_v42 = vpop.f32.mrb[24].mxu1 }
 0x945   :  { %v1717_v14 = vpop.f32.mrb[25].mxu1 }
 0x946   :  { %v991_v47 = vpop.f32.mrb[26].mxu1 }
 0x947   :  { %v1718_v2 = vpop.f32.mrb[27].mxu1 }
 0x94c   :  { %v1098_v7 = vpop.f32.mrb[28].mxu1 }
 0x94d   :  { %1325 = vrot.lane.b32.xlu1 %v1098_v7, %s1865_s27  ;;  %v1729_v31 = vpop.f32.mrb[29].mxu1 }
 0x94e   :  { %v1101_v32 = vpop.f32.mrb[30].mxu1 }
 0x94f   :  { %v1730_v4 = vpop.f32.mrb[31].mxu1 }
 0x971   :  { %v1208_v33 = vpop.f32.mrb[32].mxu1 }
 0x972   :  { %1329 = vrot.lane.b32.xlu0 %v1208_v33, %s1866_s3  ;;  %v1741_v15 = vpop.f32.mrb[33].mxu1 }
 0x973   :  { %v1211_v34 = vpop.f32.mrb[34].mxu1 }
 0x974   :  { %v1742_v5 = vpop.f32.mrb[35].mxu1 }
 0x979   :  { %v1318_v35 = vpop.f32.mrb[36].mxu1 }
 0x97a   :  { %1333 = vrot.lane.b32.xlu1 %v1318_v35, %s1867_s7  ;;  %v1753_v1 = vpop.f32.mrb[37].mxu1 }
 0x97b   :  { %v1321_v0 = vpop.f32.mrb[38].mxu1 }
 0x97c   :  { %v1754_v36 = vpop.f32.mrb[39].mxu1 }
 0x9bf   :  { %v1326_v8 = vpop.permute.xlu1 %1325 }
 0x9c0   :  { %v1336_v43 = vsel %vm159_vm9, %v988_v42, %v1326_v8 }
 0x9e4   :  { %v1330_v39 = vpop.permute.xlu0 %1329 }
 0x9e5   :  { %v1337_v48 = vsel %vm610_vm11, %v1336_v43, %v1330_v39  ;;  %v803_v43 = vrot.slane %v2272_v19, 1 }
 0x9ec   :  { %v1334_v49 = vpop.permute.xlu1 %1333 }
 0x9ed   :  { %v1338_v50 = vsel %vm612_vm12, %v1337_v48, %v1334_v49  ;;  %v804_v48 = vrot.slane %v2272_v19, 2  ;;  %v805_v49 = vrot.slane %v2272_v19, 3 }
 0x9ee   :  { %v1339_v51 = vpack.c.bf16 %v1338_v50, %v1338_v50  ;;  %v806_v50 = vrot.slane %v2272_v19, 4 }
 0x9f0   :  { %1760 = vmatmul.mubr.msk.bf16.vlgmr.msra.gmra.mrb[40].mxu0 %vm111_vm8, %v1339_v51  ;;  %v807_v51 = vrot.slane %v2272_v19, 5 }
 0xac3   :  { %v1377_v52 = vpop.f32.mrb[40].mxu0 }
 0xac4   :  { %v1384_v53 = vrot.slane %v1377_v52, 7  ;;  %v1385_v54 = vrot.slane %v1377_v52, 1  ;;  %v1386_v21 = vrot.slane %v1377_v52, 2  ;;  %v1387_v22 = vrot.slane %v1377_v52, 3  ;;  %v1761_v23 = vpop.f32.mrb[41].mxu0 }
 0xac5   :  { %v1388_v55 = vrot.slane %v1377_v52, 4  ;;  %v1389_v56 = vrot.slane %v1377_v52, 5  ;;  %v1390_v44 = vrot.slane %v1377_v52, 6  ;;  %v2321_v24 = vadd.f32 %v1377_v52, %v2164_v18  ;;  %v1380_v57 = vpop.f32.mrb[42].mxu0 }
 0xac6   :  { %v2324_v61 = vadd.f32 %v1384_v53, %v2158_v16  ;;  %v2327_v20 = vadd.f32 %v1385_v54, %v2167_v27  ;;  %v2330_v25 = vadd.f32 %v1386_v21, %v2170_v28  ;;  %v2333_v46 = vadd.f32 %v1387_v22, %v2161_v17  ;;  %v1762_v58 = vpop.f32.mrb[43].mxu0 }
 0xac7   :  { %v2336_v26 = vadd.f32 %v1388_v55, %v2173_v29  ;;  %v2339_v18 = vadd.f32 %v1389_v56, %v2176_v30  ;;  %v1408_v16 = vpack.c.bf16 %v2321_v24, %v2321_v24  ;;  %v2344_v59 = vadd.f32 %v1390_v44, %v2179_v3 }
 0xac8   :  { %v1407_v27 = vpack.c.bf16 %v2324_v61, %v2324_v61  ;;  %v1409_v17 = vpack.c.bf16 %v2327_v20, %v2327_v20  ;;  %v1410_v28 = vpack.c.bf16 %v2330_v25, %v2330_v25  ;;  %v1411_v29 = vpack.c.bf16 %v2333_v46, %v2333_v46 }
 0xac9   :  { %v1412_v30 = vpack.c.bf16 %v2336_v26, %v2336_v26  ;;  %v1413_v60 = vpack.c.bf16 %v2339_v18, %v2339_v18  ;;  %v1414_v9 = vpack.c.bf16 %v2344_v59, %v2344_v59  ;;  %v1424_v11 = vunpack.c.l.b16 %v1408_v16 }
 0xaca   :  { %v1423_v3 = vunpack.c.l.b16 %v1407_v27  ;;  %v1425_v62 = vunpack.c.l.b16 %v1409_v17  ;;  %v1426_v63 = vunpack.c.l.b16 %v1410_v28  ;;  %v1427_v10 = vunpack.c.l.b16 %v1411_v29 }
 0xacb   :  { %v1428_v47 = vunpack.c.l.b16 %v1412_v30  ;;  %v1429_v2 = vunpack.c.l.b16 %v1413_v60  ;;  %v1430_v31 = vunpack.c.l.b16 %v1414_v9  ;;  %v808_v52 = vrot.slane %v2272_v19, 6 }
 0xacc   :  { %v1431_v42 = vrot.slane %v1423_v3, 1  ;;  %v1433_v14 = vrot.slane %v1425_v62, 7  ;;  %v1435_v7 = vrot.slane %v1426_v63, 6  ;;  %v1437_v33 = vrot.slane %v1427_v10, 5 }
 0xacd   :  { %v1439_v34 = vrot.slane %v1428_v47, 4  ;;  %v1441_v35 = vrot.slane %v1429_v2, 3  ;;  %v1443_v0 = vrot.slane %v1430_v31, 2  ;;  %v809_v53 = vrot.slane %v2272_v19, 7 }
 0xace   :  { %v1432_v32 = vsel %vm78_vm1, %v1424_v11, %v1431_v42  ;;  %v818_v54 = vadd.f32 %v2272_v19, %v2182_v6  ;;  %v819_v21 = vadd.f32 %v803_v43, %v2185_v37  ;;  %v820_v22 = vadd.f32 %v804_v48, %v2188_v12 }
 0xacf   :  { %v1434_v4 = vsel %vm81_vm2, %v1433_v14, %v1432_v32  ;;  %v821_v23 = vadd.f32 %v805_v49, %v2191_v13  ;;  %v822_v55 = vadd.f32 %v806_v50, %v2194_v38  ;;  %v823_v56 = vadd.f32 %v807_v51, %v2197_v40 }
 0xad0   :  { %v1436_v15 = vsel %vm84_vm3, %v1435_v7, %v1434_v4  ;;  %v824_v44 = vadd.f32 %v808_v52, %v2200_v41  ;;  %v825_v57 = vadd.f32 %v809_v53, %v2205_v45 }
 0xad1   :  { %v1438_v5 = vsel %vm87_vm4, %v1437_v33, %v1436_v15 }
 0xad2   :  { %v1440_v1 = vsel %vm90_vm5, %v1439_v34, %v1438_v5 }
 0xad3   :  { %v1442_v36 = vsel %vm93_vm6, %v1441_v35, %v1440_v1 }
 0xad4   :  { %v1444_v8 = vsel %vm96_vm7, %v1443_v0, %v1442_v36 }
 0xad5   :  { %v1445_v39 = vpack.c.b16 %v1444_v8, %v1444_v8 }
 0xad7   :  { %1768 = vmatmul.mubr.msk.bf16.vlgmr.msra.gmra.mrb[40].mxu1 %vm111_vm8, %v1445_v39 }
 0xbaa   :  { %v1483_v58 = vpop.f32.mrb[40].mxu1 }
 0xbab   :  { %v1490_v16 = vrot.slane %v1483_v58, 7  ;;  %v1491_v27 = vrot.slane %v1483_v58, 1  ;;  %v1492_v6 = vrot.slane %v1483_v58, 2  ;;  %v1493_v19 = vrot.slane %v1483_v58, 3  ;;  %v1769_v37 = vpop.f32.mrb[41].mxu1 }
 0xbac   :  { %v1494_v12 = vrot.slane %v1483_v58, 4  ;;  %v1495_v13 = vrot.slane %v1483_v58, 5  ;;  %v1496_v17 = vrot.slane %v1483_v58, 6  ;;  %v1506_v38 = vadd.f32 %v1483_v58, %v2321_v24  ;;  %v1486_v40 = vpop.f32.mrb[42].mxu1 }
 0xbad   :  { %v1505_v41 = vadd.f32 %v1490_v16, %v2324_v61  ;;  %v1507_v45 = vadd.f32 %v1491_v27, %v2327_v20  ;;  %v1508_v28 = vadd.f32 %v1492_v6, %v2330_v25  ;;  %v1509_v29 = vadd.f32 %v1493_v19, %v2333_v46  ;;  %v1770_v30 = vpop.f32.mrb[43].mxu1 }
 0xbae   :  { %v1510_v60 = vadd.f32 %v1494_v12, %v2336_v26  ;;  %v1511_v3 = vadd.f32 %v1495_v13, %v2339_v18  ;;  %v1512_v62 = vadd.f32 %v1496_v17, %v2344_v59  ;;  %v1515_v63 = vsel %vm1513_vm13, %v819_v21, %v1506_v38 }
 0xbaf   :  { %v1514_v24 = vsel %vm1513_vm13, %v818_v54, %v1505_v41  ;;  %v1516_v61 = vsel %vm1513_vm13, %v820_v22, %v1507_v45  ;;  %v1517_v20 = vsel %vm1513_vm13, %v821_v23, %v1508_v28  ;;  %v1518_v25 = vsel %vm1513_vm13, %v822_v55, %v1509_v29  ;;  %1524 = vst.msk [vmem:[#allocation2 + $0x2] sm:$0x3] %vm1522_vm14, %v1515_v63 }
 0xbb0   :  { %v1519_v46 = vsel %vm1513_vm13, %v823_v56, %v1510_v60  ;;  %v1520_v26 = vsel %vm1513_vm13, %v824_v44, %v1511_v3  ;;  %v1521_v18 = vsel %vm1513_vm13, %v825_v57, %v1512_v62  ;;  %1523 = vst.msk [vmem:[#allocation2] sm:$0x3] %vm1522_vm14, %v1514_v24  ;;  %1525 = vst.msk [vmem:[#allocation2 + $0x4] sm:$0x3] %vm1522_vm14, %v1516_v61 }
 0xbb1   :  { %1526 = vst.msk [vmem:[#allocation2 + $0x6] sm:$0x3] %vm1522_vm14, %v1517_v20  ;;  %1527 = vst.msk [vmem:[#allocation2 + $0x8] sm:$0x3] %vm1522_vm14, %v1518_v25 }
 0xbb2   :  { %1528 = vst.msk [vmem:[#allocation2 + $0xa] sm:$0x3] %vm1522_vm14, %v1519_v46  ;;  %1529 = vst.msk [vmem:[#allocation2 + $0xc] sm:$0x3] %vm1522_vm14, %v1520_v26 }
 0xbb3   :  { %1530 = vst.msk [vmem:[#allocation2 + $0xe] sm:$0x3] %vm1522_vm14, %v1521_v18 }
 0xbb4   :  { %1839 = shalt.err (!%p1836_p4)
}
 0xbb5   :  { %s1840_s16 = scalar_lea.hbm %s2433_s6, 256 }
 0xbb6   :  { %p1841_p5 = scmp.ne.s32.totalorder %s2433_s6, %s1840_s16  ;;  %p1844_p6 = scmp.lt.u32.totalorder %s1840_s16, %s2433_s6 }
 0xbb8   :  { %p1846_p7 = pnand %p1844_p6, %p1841_p5 }
 0xbba   :  { %1849 = shalt.err (!%p1846_p7)
}
 0xbbb   :  { %s1869_s20 = smov 32   ;;  %s1870_s21 = smov 2  }
 0xbbc   :  { %1542 = dma.vmem_to_hbm [thread:$0]  %s2393_s5, 256, %s2433_s6, [#allocation3], %s1869_s20, %s1869_s20, %s1870_s21  }
 0xbbd   :  { %1850 = dma.done.wait [#allocation3], 256  }
 0xbbe   :  { %1851 = vsyncadd [#allocation3], 4294967040 }
 0xbbf   :  { %1546 = vsyncpa [#allocation3], 1 }

</bundles_post_ra>
